<compile_context>
chip_gen: v6e
topology: v6e:2x2x1
jax: 0.10.0
libtpu: 0.0.40
codegen_flags: <defaults>
</compile_context>

<pallas_src>
import numpy as np
import jax
import jax.numpy as jnp
from jax.experimental import pallas as pl
from jax.experimental.pallas import tpu as pltpu

# ---- static model configuration (small, deterministic) ----
B = 4                       # batch
CX = 8                      # covariate dim
LAT = 16                    # encoder latent dim
TD = 3                      # trans_dim (number of states)
NUM_PROBS = TD * TD         # num_probs
PPD = 2 * NUM_PROBS         # [P flat | P^-1 flat] width
TRANS = np.array([[0, 1, 1],
                  [0, 0, 1],
                  [0, 0, 0]], dtype=np.int32)   # illness-death transitions
NH = int(TRANS.sum())       # number_of_hazards
SD = PPD + NH               # full ODE state dim (21)
HID = 32                    # odefunc MLP hidden width
DOUT = 2 * NH               # odefunc MLP output width
BETA = 1.0                  # softplus beta
NSTEPS = 8                  # fixed Euler substeps per time interval (unrolled)
TMAX = 16                   # padded number of unique time points (static)
TN = 2 * TD * NUM_PROBS     # 54 — selection-matmul inner width


# -------------------- in-kernel helpers --------------------------------------
def _softplus_beta(x):
    bx = BETA * x
    return jnp.where(bx > 20.0, x,
                     jnp.log(1.0 + jnp.exp(jnp.minimum(bx, 20.0))) / BETA)


# -------------------- single fused Pallas kernel ------------------------------
def _survnode_kernel(ntimes_ref, times_ref, tstart_idx_ref, tstop_idx_ref,
                     x_ref, we_ref, be_ref,
                     w1s_ref, w1l_ref, w1t_ref, b1_ref, w2_ref, b2_ref,
                     w2z_ref, b2z_ref, hazmask_ref,
                     lrcat_ref, scatrl_ref, gsumd_ref,
                     lcatinv_ref, rcatp_ref, gsum_ref,
                     sel_s_ref, sel_lam_ref, t2_ref, init_ref,
                     s_ref, lam_ref, haz_ref,
                     traj):
    # ---- encoder + hoisted latent projection (b1 folded in) ----
    lat = jnp.tanh(jnp.dot(x_ref[...], we_ref[...],
                           preferred_element_type=jnp.float32) + be_ref[...])
    latpb = (jnp.dot(lat, w1l_ref[...], preferred_element_type=jnp.float32)
             + b1_ref[...])                                     # (B, HID)

    w1s = w1s_ref[...]
    w1t = w1t_ref[...]
    w2z = w2z_ref[...]
    b2z = b2z_ref[...]
    hazmask = hazmask_ref[...]
    lrcat = lrcat_ref[...]
    scatrl = scatrl_ref[...]
    gsumd = gsumd_ref[...]

    init = init_ref[...]                                        # (B, SD)
    traj[0] = init
    n = ntimes_ref[0]                                           # true #times

    def step(t, state):
        t0 = times_ref[t - 1]
        t1 = times_ref[t]
        dt = (t1 - t0) * (1.0 / NSTEPS)
        tw = latpb + t0 * w1t         # hoisted time broadcast (B, HID)
        dtw = dt * w1t
        # fully unrolled explicit-Euler substeps
        for _ in range(NSTEPS):
            h = jnp.tanh(
                jnp.dot(state, w1s, preferred_element_type=jnp.float32) + tw)
            oz = jnp.dot(h, w2z, preferred_element_type=jnp.float32) + b2z
            # hazards scattered into lanes PPD..PPD+NH-1 of an SD-wide vector
            hazf = _softplus_beta(oz) * hazmask
            # d[P|P^-1]/dt = [P@Q | -Q@P^-1] via precomputed selection matrices,
            # d(cumhaz)/dt = hazards (already in their lanes) -> single add.
            y1 = jnp.dot(state, lrcat, preferred_element_type=jnp.float32)
            y2 = jnp.dot(hazf, scatrl, preferred_element_type=jnp.float32)
            ddt = jnp.dot(y1 * y2, gsumd,
                          preferred_element_type=jnp.float32) + hazf
            state = state + dt * ddt
            tw = tw + dtw
        traj[t] = state
        return state

    # dynamic bound -> padded dt==0 steps are never executed
    last = jax.lax.fori_loop(1, n, step, init)                  # (B, SD)

    # ---- in-kernel per-sample gathers at tstart/tstop time indices ----
    rows = jax.lax.broadcasted_iota(jnp.int32, (B, 1), 0)
    pstart = jnp.zeros((B, SD), jnp.float32)
    pstop = jnp.zeros((B, SD), jnp.float32)
    for i in range(B):
        rm = (rows == i).astype(jnp.float32)
        pstart = pstart + rm * traj[tstart_idx_ref[i]]
        pstop = pstop + rm * traj[tstop_idx_ref[i]]

    # ---- S = (P^-1(tstart) @ P(tstop))[from-1, from-1] ----
    s_full = jnp.dot(
        jnp.dot(pstart, lcatinv_ref[...], preferred_element_type=jnp.float32)
        * jnp.dot(pstop, rcatp_ref[...], preferred_element_type=jnp.float32),
        gsum_ref[...], preferred_element_type=jnp.float32)
    s_ref[...] = jnp.sum(s_full * sel_s_ref[...], axis=1, keepdims=True)

    # ---- odefunc.net evaluated once on stacked [state(tstop); state(tlast)] ----
    state2 = jnp.concatenate([pstop, last], axis=0)             # (2B, SD)
    latp2 = jnp.concatenate([latpb, latpb], axis=0)             # (2B, HID)
    h2 = jnp.tanh(jnp.dot(state2, w1s, preferred_element_type=jnp.float32)
                  + latp2 + t2_ref[...] * w1t)
    o2 = jnp.dot(h2, w2_ref[...], preferred_element_type=jnp.float32) + b2_ref[...]
    o_stop = o2[:B]       # tstop rows -> lam
    o_last = o2[B:]       # tlast rows -> all_hazards_T
    lam_ref[...] = jnp.sum(_softplus_beta(o_stop) * sel_lam_ref[...],
                           axis=1, keepdims=True)
    col = jax.lax.broadcasted_iota(jnp.int32, (B, DOUT), 1)
    haz_ref[...] = jnp.where(col < NH, _softplus_beta(o_last), o_last)


# -------------------- host wrapper --------------------------------------------
def survnode_forward(x, tstart, tstop, from_state, to_state, params):
    (we, be, w1s, w1l, w1t, b1, w2, b2) = params

    # ---- torch.unique-style index construction (host glue; precompute once per
    #      dataset — passed to the kernel as SMEM scalars so the device path
    #      has no dynamic-shape work) ----
    tstart_np = np.asarray(tstart, np.float32)
    tstop_np = np.asarray(tstop, np.float32)
    times = np.unique(np.concatenate([[np.float32(0.0)], tstart_np, tstop_np]))
    ntimes = int(times.shape[0])
    assert ntimes <= TMAX, "increase TMAX"
    tstart_idx = np.array([np.flatnonzero(times == v)[0] for v in tstart_np],
                          np.int32)
    tstop_idx = np.array([np.flatnonzero(times == v)[0] for v in tstop_np],
                         np.int32)
    times_pad = np.concatenate(
        [times, np.full(TMAX - ntimes, times[-1], np.float32)]
    ).astype(np.float32)

    # ---- precomputed structural matrices (host, tiny) ----
    trans_pos = np.flatnonzero(TRANS.reshape(-1) == 1)
    scat = np.zeros((NH, NUM_PROBS), np.float32)
    scat[np.arange(NH), trans_pos] = 1.0                 # hazard -> Q offdiag
    rsum = np.zeros((NUM_PROBS, TD), np.float32)
    diag = np.zeros((TD, NUM_PROBS), np.float32)
    for i in range(TD):
        for j in range(TD):
            rsum[i * TD + j, i] = 1.0
        diag[i, i * TD + i] = 1.0
    # full Q (incl. diagonal = -rowsum) from hazards in a single matmul
    scat_q = scat @ (np.eye(NUM_PROBS, dtype=np.float32) - rsum @ diag)

    # batched (3x3)@(3x3) on flattened operands via selection matmuls:
    # bmm(A,B)_flat = ((A @ Lcat) * (B @ Rcat)) @ Gsum
    Lcat = np.zeros((NUM_PROBS, TD * NUM_PROBS), np.float32)
    Rcat = np.zeros((NUM_PROBS, TD * NUM_PROBS), np.float32)
    Gsum = np.zeros((TD * NUM_PROBS, NUM_PROBS), np.float32)
    for i in range(TD):
        for j in range(TD):
            for k in range(TD):
                col = j * NUM_PROBS + i * TD + k
                Lcat[i * TD + j, col] = 1.0
                Rcat[j * TD + k, col] = 1.0
    for j in range(TD):
        for m in range(NUM_PROBS):
            Gsum[j * NUM_PROBS + m, m] = 1.0

    # selection matrices padded to act on the full SD-wide state / hazard rows:
    #   d(state)/dt = ((state @ lrcat_s) * (hazfull @ scatrl_s)) @ gsumd_s + hazfull
    lrcat_s = np.zeros((SD, TN), np.float32)
    lrcat_s[:NUM_PROBS, :TD * NUM_PROBS] = Lcat
    lrcat_s[NUM_PROBS:PPD, TD * NUM_PROBS:] = Rcat
    scatrl_s = np.zeros((SD, TN), np.float32)
    scatrl_s[PPD:PPD + NH, :] = np.concatenate(
        [scat_q @ Rcat, scat_q @ Lcat], axis=1)
    gsumd_s = np.zeros((TN, SD), np.float32)
    gsumd_s[:TD * NUM_PROBS, :NUM_PROBS] = Gsum
    gsumd_s[TD * NUM_PROBS:, NUM_PROBS:PPD] = -Gsum

    # bmm selection for S (left = P^-1(tstart), right = P(tstop)), SD rows:
    lcat_inv = np.zeros((SD, TD * NUM_PROBS), np.float32)
    lcat_inv[NUM_PROBS:PPD, :] = Lcat
    rcat_p = np.zeros((SD, TD * NUM_PROBS), np.float32)
    rcat_p[:NUM_PROBS, :] = Rcat

    # odefunc output scattered into hazard lanes of the SD-wide derivative:
    w2z = jnp.zeros((HID, SD), jnp.float32).at[:, PPD:PPD + NH].set(w2[:, :NH])
    b2z = jnp.zeros((1, SD), jnp.float32).at[:, PPD:PPD + NH].set(b2[:, :NH])
    hazmask = np.zeros((1, SD), np.float32)
    hazmask[:, PPD:PPD + NH] = 1.0

    # per-sample selection masks for S / lam (host)
    fmask = np.eye(TD, dtype=np.float32)[np.asarray(from_state) - 1]
    tmask = np.eye(TD, dtype=np.float32)[np.asarray(to_state) - 1]
    sel_s = (fmask[:, :, None] * fmask[:, None, :]).reshape(B, NUM_PROBS)
    sel_lam = (fmask[:, :, None] * tmask[:, None, :]).reshape(B, NUM_PROBS)
    sel_lam_pad = np.zeros((B, DOUT), np.float32)
    sel_lam_pad[:, :NH] = sel_lam @ scat.T               # hazard-space selector

    # time column for the stacked head evaluation: [tstop ; max(tstop)]
    tmax = float(tstop_np.max())
    t2col = np.concatenate([tstop_np.reshape(B, 1),
                            np.full((B, 1), tmax, np.float32)],
                           axis=0).astype(np.float32)

    # initial ODE state [P=I | P^-1=I | cumhaz=0]
    eye_flat = np.eye(TD, dtype=np.float32).reshape(-1)
    init_state = np.tile(
        np.concatenate([eye_flat, eye_flat, np.zeros(NH, np.float32)])[None, :],
        (B, 1)).astype(np.float32)

    smem = pl.BlockSpec(memory_space=pltpu.MemorySpace.SMEM)
    vmem = pl.BlockSpec(memory_space=pltpu.MemorySpace.VMEM)

    S, lam, all_hazards_T = pl.pallas_call(
        _survnode_kernel,
        out_shape=(jax.ShapeDtypeStruct((B, 1), jnp.float32),
                   jax.ShapeDtypeStruct((B, 1), jnp.float32),
                   jax.ShapeDtypeStruct((B, DOUT), jnp.float32)),
        in_specs=[smem, smem, smem, smem] + [vmem] * 22,
        out_specs=(vmem, vmem, vmem),
        scratch_shapes=[pltpu.VMEM((TMAX, B, SD), jnp.float32)],
    )(jnp.asarray(np.array([ntimes], np.int32)),
      jnp.asarray(times_pad),
      jnp.asarray(tstart_idx), jnp.asarray(tstop_idx),
      x, we, be, w1s, w1l, w1t, b1, w2, b2,
      w2z, b2z, jnp.asarray(hazmask),
      jnp.asarray(lrcat_s), jnp.asarray(scatrl_s), jnp.asarray(gsumd_s),
      jnp.asarray(lcat_inv), jnp.asarray(rcat_p), jnp.asarray(Gsum),
      jnp.asarray(sel_s), jnp.asarray(sel_lam_pad),
      jnp.asarray(t2col), jnp.asarray(init_state))

    return S[:, 0], lam[:, 0], all_hazards_T


if __name__ == "__main__":
    key = jax.random.PRNGKey(0)
    ks = jax.random.split(key, 6)

    # deterministic parameters (synthetic, not a checkpoint load)
    we = 0.3 * jax.random.normal(ks[0], (CX, LAT), jnp.float32)
    be = jnp.zeros((1, LAT), jnp.float32)
    w1s = 0.2 * jax.random.normal(ks[1], (SD, HID), jnp.float32)
    w1l = 0.2 * jax.random.normal(ks[2], (LAT, HID), jnp.float32)
    w1t = 0.2 * jax.random.normal(ks[3], (1, HID), jnp.float32)
    b1 = jnp.zeros((1, HID), jnp.float32)
    w2 = 0.2 * jax.random.normal(ks[4], (HID, DOUT), jnp.float32)
    b2 = jnp.zeros((1, DOUT), jnp.float32)
    params = (we, be, w1s, w1l, w1t, b1, w2, b2)

    # deterministic example inputs
    x = jax.random.normal(ks[5], (B, CX), jnp.float32)
    tstart = np.array([0.0, 0.5, 1.0, 0.5], np.float32)
    tstop = np.array([1.0, 1.5, 2.0, 2.5], np.float32)
    from_state = np.array([1, 1, 2, 1], np.int32)
    to_state = np.array([2, 3, 3, 2], np.int32)

    S, lam, all_hazards_T = survnode_forward(
        x, tstart, tstop, from_state, to_state, params)
    jax.block_until_ready((S, lam, all_hazards_T))

    assert S.shape == (B,)
    assert lam.shape == (B,)
    assert all_hazards_T.shape == (B, DOUT)
    assert bool(jnp.all(jnp.isfinite(S)))
    assert bool(jnp.all(jnp.isfinite(lam)))
    assert bool(jnp.all(jnp.isfinite(all_hazards_T)))
    print("KERNEL_OK")
</pallas_src>

<mosaic_0001>
module attributes {stable_mosaic.version = 11 : i64} {
  func.func @_survnode_kernel(%arg0: memref<1xi32, #tpu.memory_space<smem>>, %arg1: memref<16xf32, #tpu.memory_space<smem>>, %arg2: memref<4xi32, #tpu.memory_space<smem>>, %arg3: memref<4xi32, #tpu.memory_space<smem>>, %arg4: memref<4x8xf32, #tpu.memory_space<vmem>>, %arg5: memref<8x16xf32, #tpu.memory_space<vmem>>, %arg6: memref<1x16xf32, #tpu.memory_space<vmem>>, %arg7: memref<21x32xf32, #tpu.memory_space<vmem>>, %arg8: memref<16x32xf32, #tpu.memory_space<vmem>>, %arg9: memref<1x32xf32, #tpu.memory_space<vmem>>, %arg10: memref<1x32xf32, #tpu.memory_space<vmem>>, %arg11: memref<32x6xf32, #tpu.memory_space<vmem>>, %arg12: memref<1x6xf32, #tpu.memory_space<vmem>>, %arg13: memref<32x21xf32, #tpu.memory_space<vmem>>, %arg14: memref<1x21xf32, #tpu.memory_space<vmem>>, %arg15: memref<1x21xf32, #tpu.memory_space<vmem>>, %arg16: memref<21x54xf32, #tpu.memory_space<vmem>>, %arg17: memref<21x54xf32, #tpu.memory_space<vmem>>, %arg18: memref<54x21xf32, #tpu.memory_space<vmem>>, %arg19: memref<21x27xf32, #tpu.memory_space<vmem>>, %arg20: memref<21x27xf32, #tpu.memory_space<vmem>>, %arg21: memref<27x9xf32, #tpu.memory_space<vmem>>, %arg22: memref<4x9xf32, #tpu.memory_space<vmem>>, %arg23: memref<4x6xf32, #tpu.memory_space<vmem>>, %arg24: memref<8x1xf32, #tpu.memory_space<vmem>>, %arg25: memref<4x21xf32, #tpu.memory_space<vmem>>, %arg26: memref<4x1xf32, #tpu.memory_space<vmem>>, %arg27: memref<4x1xf32, #tpu.memory_space<vmem>>, %arg28: memref<4x6xf32, #tpu.memory_space<vmem>>, %arg29: memref<16x4x21xf32, #tpu.memory_space<vmem>>) attributes {dimension_semantics = [], scalar_prefetch = 0 : i64, scratch_operands = 1 : i64, tpu.core_type = #tpu.core_type<tc>} {
    %c0 = arith.constant 0 : index
    %c0_0 = arith.constant 0 : index
    %0 = vector.load %arg4[%c0, %c0_0] : memref<4x8xf32, #tpu.memory_space<vmem>>, vector<4x8xf32>
    %c0_1 = arith.constant 0 : index
    %c0_2 = arith.constant 0 : index
    %1 = vector.load %arg5[%c0_1, %c0_2] : memref<8x16xf32, #tpu.memory_space<vmem>>, vector<8x16xf32>
    %cst = arith.constant dense<0.000000e+00> : vector<4x16xf32>
    %2 = tpu.matmul %0, %1, %cst {dimension_numbers = #tpu.dot_dimension_numbers<[1], [0], [0], [1], [0, 0, 1, 1], [], []>} : vector<4x8xf32>, vector<8x16xf32>, vector<4x16xf32> -> vector<4x16xf32>
    %c0_3 = arith.constant 0 : index
    %c0_4 = arith.constant 0 : index
    %3 = vector.load %arg6[%c0_3, %c0_4] : memref<1x16xf32, #tpu.memory_space<vmem>>, vector<1x16xf32>
    %4 = vector.broadcast %3 : vector<1x16xf32> to vector<4x16xf32>
    %5 = arith.addf %2, %4 : vector<4x16xf32>
    %6 = math.tanh %5 : vector<4x16xf32>
    %c0_5 = arith.constant 0 : index
    %c0_6 = arith.constant 0 : index
    %7 = vector.load %arg8[%c0_5, %c0_6] : memref<16x32xf32, #tpu.memory_space<vmem>>, vector<16x32xf32>
    %cst_7 = arith.constant dense<0.000000e+00> : vector<4x32xf32>
    %8 = tpu.matmul %6, %7, %cst_7 {dimension_numbers = #tpu.dot_dimension_numbers<[1], [0], [0], [1], [0, 0, 1, 1], [], []>} : vector<4x16xf32>, vector<16x32xf32>, vector<4x32xf32> -> vector<4x32xf32>
    %c0_8 = arith.constant 0 : index
    %c0_9 = arith.constant 0 : index
    %9 = vector.load %arg10[%c0_8, %c0_9] : memref<1x32xf32, #tpu.memory_space<vmem>>, vector<1x32xf32>
    %10 = vector.broadcast %9 : vector<1x32xf32> to vector<4x32xf32>
    %11 = arith.addf %8, %10 : vector<4x32xf32>
    %c0_10 = arith.constant 0 : index
    %c0_11 = arith.constant 0 : index
    %12 = vector.load %arg7[%c0_10, %c0_11] : memref<21x32xf32, #tpu.memory_space<vmem>>, vector<21x32xf32>
    %c0_12 = arith.constant 0 : index
    %c0_13 = arith.constant 0 : index
    %13 = vector.load %arg9[%c0_12, %c0_13] : memref<1x32xf32, #tpu.memory_space<vmem>>, vector<1x32xf32>
    %c0_14 = arith.constant 0 : index
    %c0_15 = arith.constant 0 : index
    %14 = vector.load %arg13[%c0_14, %c0_15] : memref<32x21xf32, #tpu.memory_space<vmem>>, vector<32x21xf32>
    %c0_16 = arith.constant 0 : index
    %c0_17 = arith.constant 0 : index
    %15 = vector.load %arg14[%c0_16, %c0_17] : memref<1x21xf32, #tpu.memory_space<vmem>>, vector<1x21xf32>
    %c0_18 = arith.constant 0 : index
    %c0_19 = arith.constant 0 : index
    %16 = vector.load %arg15[%c0_18, %c0_19] : memref<1x21xf32, #tpu.memory_space<vmem>>, vector<1x21xf32>
    %c0_20 = arith.constant 0 : index
    %c0_21 = arith.constant 0 : index
    %17 = vector.load %arg16[%c0_20, %c0_21] : memref<21x54xf32, #tpu.memory_space<vmem>>, vector<21x54xf32>
    %c0_22 = arith.constant 0 : index
    %c0_23 = arith.constant 0 : index
    %18 = vector.load %arg17[%c0_22, %c0_23] : memref<21x54xf32, #tpu.memory_space<vmem>>, vector<21x54xf32>
    %c0_24 = arith.constant 0 : index
    %c0_25 = arith.constant 0 : index
    %19 = vector.load %arg18[%c0_24, %c0_25] : memref<54x21xf32, #tpu.memory_space<vmem>>, vector<54x21xf32>
    %c0_26 = arith.constant 0 : index
    %c0_27 = arith.constant 0 : index
    %20 = vector.load %arg25[%c0_26, %c0_27] : memref<4x21xf32, #tpu.memory_space<vmem>>, vector<4x21xf32>
    %c0_28 = arith.constant 0 : index
    %c0_29 = arith.constant 0 : index
    %c0_30 = arith.constant 0 : index
    %21 = vector.load %arg29[%c0_28, %c0_29, %c0_30] : memref<16x4x21xf32, #tpu.memory_space<vmem>>, vector<1x4x21xf32>
    %22 = vector.shape_cast %21 : vector<1x4x21xf32> to vector<4x21xf32>
    %23 = vector.shape_cast %20 : vector<4x21xf32> to vector<1x4x21xf32>
    tpu.vector_store %arg29[%c0_28, %c0_29, %c0_30], %23 {strides = array<i32>} : memref<16x4x21xf32, #tpu.memory_space<vmem>>, vector<1x4x21xf32>,
    %c0_31 = arith.constant 0 : index
    %24 = memref.load %arg0[%c0_31] : memref<1xi32, #tpu.memory_space<smem>>
    %c1_i32 = arith.constant 1 : i32
    %25 = arith.subi %24, %c1_i32 : i32
    %26 = arith.addi %c1_i32, %25 : i32
    %c1_i32_32 = arith.constant 1 : i32
    %27 = scf.for %arg30 = %c1_i32 to %26 step %c1_i32_32 iter_args(%arg31 = %20) -> (vector<4x21xf32>)  : i32 {
      %c1_i32_97 = arith.constant 1 : i32
      %168 = arith.subi %arg30, %c1_i32_97 : i32
      %169 = arith.index_cast %168 : i32 to index
      %170 = memref.load %arg1[%169] : memref<16xf32, #tpu.memory_space<smem>>
      %171 = arith.index_cast %arg30 : i32 to index
      %172 = memref.load %arg1[%171] : memref<16xf32, #tpu.memory_space<smem>>
      %173 = arith.subf %172, %170 : f32
      %cst_98 = arith.constant 1.250000e-01 : f32
      %174 = arith.mulf %173, %cst_98 : f32
      %175 = vector.broadcast %170 : f32 to vector<1x32xf32>
      %176 = arith.mulf %175, %13 : vector<1x32xf32>
      %177 = vector.broadcast %176 : vector<1x32xf32> to vector<4x32xf32>
      %178 = arith.addf %11, %177 : vector<4x32xf32>
      %179 = vector.broadcast %174 : f32 to vector<1x32xf32>
      %180 = arith.mulf %179, %13 : vector<1x32xf32>
      %cst_99 = arith.constant dense<0.000000e+00> : vector<4x32xf32>
      %181 = tpu.matmul %arg31, %12, %cst_99 {dimension_numbers = #tpu.dot_dimension_numbers<[1], [0], [0], [1], [0, 0, 1, 1], [], []>} : vector<4x21xf32>, vector<21x32xf32>, vector<4x32xf32> -> vector<4x32xf32>
      %182 = arith.addf %181, %178 : vector<4x32xf32>
      %183 = math.tanh %182 : vector<4x32xf32>
      %cst_100 = arith.constant dense<0.000000e+00> : vector<4x21xf32>
      %184 = tpu.matmul %183, %14, %cst_100 {dimension_numbers = #tpu.dot_dimension_numbers<[1], [0], [0], [1], [0, 0, 1, 1], [], []>} : vector<4x32xf32>, vector<32x21xf32>, vector<4x21xf32> -> vector<4x21xf32>
      %185 = vector.broadcast %15 : vector<1x21xf32> to vector<4x21xf32>
      %186 = arith.addf %184, %185 : vector<4x21xf32>
      %cst_101 = arith.constant 1.000000e+00 : f32
      %187 = vector.broadcast %cst_101 : f32 to vector<4x21xf32>
      %188 = arith.mulf %187, %186 : vector<4x21xf32>
      %cst_102 = arith.constant 2.000000e+01 : f32
      %189 = vector.broadcast %cst_102 : f32 to vector<4x21xf32>
      %190 = arith.cmpf ogt, %188, %189 : vector<4x21xf32>
      %cst_103 = arith.constant 2.000000e+01 : f32
      %191 = vector.broadcast %cst_103 : f32 to vector<4x21xf32>
      %192 = arith.minimumf %188, %191 : vector<4x21xf32>
      %193 = math.exp %192 : vector<4x21xf32>
      %cst_104 = arith.constant 1.000000e+00 : f32
      %194 = vector.broadcast %cst_104 : f32 to vector<4x21xf32>
      %195 = arith.addf %194, %193 : vector<4x21xf32>
      %196 = math.log %195 : vector<4x21xf32>
      %cst_105 = arith.constant 1.000000e+00 : f32
      %197 = vector.broadcast %cst_105 : f32 to vector<4x21xf32>
      %198 = arith.divf %196, %197 : vector<4x21xf32>
      %199 = arith.select %190, %186, %198 : vector<4x21xi1>, vector<4x21xf32>
      %200 = vector.broadcast %16 : vector<1x21xf32> to vector<4x21xf32>
      %201 = arith.mulf %199, %200 : vector<4x21xf32>
      %cst_106 = arith.constant dense<0.000000e+00> : vector<4x54xf32>
      %202 = tpu.matmul %arg31, %17, %cst_106 {dimension_numbers = #tpu.dot_dimension_numbers<[1], [0], [0], [1], [0, 0, 1, 1], [], []>} : vector<4x21xf32>, vector<21x54xf32>, vector<4x54xf32> -> vector<4x54xf32>
      %cst_107 = arith.constant dense<0.000000e+00> : vector<4x54xf32>
      %203 = tpu.matmul %201, %18, %cst_107 {dimension_numbers = #tpu.dot_dimension_numbers<[1], [0], [0], [1], [0, 0, 1, 1], [], []>} : vector<4x21xf32>, vector<21x54xf32>, vector<4x54xf32> -> vector<4x54xf32>
      %204 = arith.mulf %202, %203 : vector<4x54xf32>
      %cst_108 = arith.constant dense<0.000000e+00> : vector<4x21xf32>
      %205 = tpu.matmul %204, %19, %cst_108 {dimension_numbers = #tpu.dot_dimension_numbers<[1], [0], [0], [1], [0, 0, 1, 1], [], []>} : vector<4x54xf32>, vector<54x21xf32>, vector<4x21xf32> -> vector<4x21xf32>
      %206 = arith.addf %205, %201 : vector<4x21xf32>
      %207 = vector.broadcast %174 : f32 to vector<4x21xf32>
      %208 = arith.mulf %207, %206 : vector<4x21xf32>
      %209 = arith.addf %arg31, %208 : vector<4x21xf32>
      %210 = vector.broadcast %180 : vector<1x32xf32> to vector<4x32xf32>
      %211 = arith.addf %178, %210 : vector<4x32xf32>
      %cst_109 = arith.constant dense<0.000000e+00> : vector<4x32xf32>
      %212 = tpu.matmul %209, %12, %cst_109 {dimension_numbers = #tpu.dot_dimension_numbers<[1], [0], [0], [1], [0, 0, 1, 1], [], []>} : vector<4x21xf32>, vector<21x32xf32>, vector<4x32xf32> -> vector<4x32xf32>
      %213 = arith.addf %212, %211 : vector<4x32xf32>
      %214 = math.tanh %213 : vector<4x32xf32>
      %cst_110 = arith.constant dense<0.000000e+00> : vector<4x21xf32>
      %215 = tpu.matmul %214, %14, %cst_110 {dimension_numbers = #tpu.dot_dimension_numbers<[1], [0], [0], [1], [0, 0, 1, 1], [], []>} : vector<4x32xf32>, vector<32x21xf32>, vector<4x21xf32> -> vector<4x21xf32>
      %216 = vector.broadcast %15 : vector<1x21xf32> to vector<4x21xf32>
      %217 = arith.addf %215, %216 : vector<4x21xf32>
      %cst_111 = arith.constant 1.000000e+00 : f32
      %218 = vector.broadcast %cst_111 : f32 to vector<4x21xf32>
      %219 = arith.mulf %218, %217 : vector<4x21xf32>
      %cst_112 = arith.constant 2.000000e+01 : f32
      %220 = vector.broadcast %cst_112 : f32 to vector<4x21xf32>
      %221 = arith.cmpf ogt, %219, %220 : vector<4x21xf32>
      %cst_113 = arith.constant 2.000000e+01 : f32
      %222 = vector.broadcast %cst_113 : f32 to vector<4x21xf32>
      %223 = arith.minimumf %219, %222 : vector<4x21xf32>
      %224 = math.exp %223 : vector<4x21xf32>
      %cst_114 = arith.constant 1.000000e+00 : f32
      %225 = vector.broadcast %cst_114 : f32 to vector<4x21xf32>
      %226 = arith.addf %225, %224 : vector<4x21xf32>
      %227 = math.log %226 : vector<4x21xf32>
      %cst_115 = arith.constant 1.000000e+00 : f32
      %228 = vector.broadcast %cst_115 : f32 to vector<4x21xf32>
      %229 = arith.divf %227, %228 : vector<4x21xf32>
      %230 = arith.select %221, %217, %229 : vector<4x21xi1>, vector<4x21xf32>
      %231 = vector.broadcast %16 : vector<1x21xf32> to vector<4x21xf32>
      %232 = arith.mulf %230, %231 : vector<4x21xf32>
      %cst_116 = arith.constant dense<0.000000e+00> : vector<4x54xf32>
      %233 = tpu.matmul %209, %17, %cst_116 {dimension_numbers = #tpu.dot_dimension_numbers<[1], [0], [0], [1], [0, 0, 1, 1], [], []>} : vector<4x21xf32>, vector<21x54xf32>, vector<4x54xf32> -> vector<4x54xf32>
      %cst_117 = arith.constant dense<0.000000e+00> : vector<4x54xf32>
      %234 = tpu.matmul %232, %18, %cst_117 {dimension_numbers = #tpu.dot_dimension_numbers<[1], [0], [0], [1], [0, 0, 1, 1], [], []>} : vector<4x21xf32>, vector<21x54xf32>, vector<4x54xf32> -> vector<4x54xf32>
      %235 = arith.mulf %233, %234 : vector<4x54xf32>
      %cst_118 = arith.constant dense<0.000000e+00> : vector<4x21xf32>
      %236 = tpu.matmul %235, %19, %cst_118 {dimension_numbers = #tpu.dot_dimension_numbers<[1], [0], [0], [1], [0, 0, 1, 1], [], []>} : vector<4x54xf32>, vector<54x21xf32>, vector<4x21xf32> -> vector<4x21xf32>
      %237 = arith.addf %236, %232 : vector<4x21xf32>
      %238 = vector.broadcast %174 : f32 to vector<4x21xf32>
      %239 = arith.mulf %238, %237 : vector<4x21xf32>
      %240 = arith.addf %209, %239 : vector<4x21xf32>
      %241 = vector.broadcast %180 : vector<1x32xf32> to vector<4x32xf32>
      %242 = arith.addf %211, %241 : vector<4x32xf32>
      %cst_119 = arith.constant dense<0.000000e+00> : vector<4x32xf32>
      %243 = tpu.matmul %240, %12, %cst_119 {dimension_numbers = #tpu.dot_dimension_numbers<[1], [0], [0], [1], [0, 0, 1, 1], [], []>} : vector<4x21xf32>, vector<21x32xf32>, vector<4x32xf32> -> vector<4x32xf32>
      %244 = arith.addf %243, %242 : vector<4x32xf32>
      %245 = math.tanh %244 : vector<4x32xf32>
      %cst_120 = arith.constant dense<0.000000e+00> : vector<4x21xf32>
      %246 = tpu.matmul %245, %14, %cst_120 {dimension_numbers = #tpu.dot_dimension_numbers<[1], [0], [0], [1], [0, 0, 1, 1], [], []>} : vector<4x32xf32>, vector<32x21xf32>, vector<4x21xf32> -> vector<4x21xf32>
      %247 = vector.broadcast %15 : vector<1x21xf32> to vector<4x21xf32>
      %248 = arith.addf %246, %247 : vector<4x21xf32>
      %cst_121 = arith.constant 1.000000e+00 : f32
      %249 = vector.broadcast %cst_121 : f32 to vector<4x21xf32>
      %250 = arith.mulf %249, %248 : vector<4x21xf32>
      %cst_122 = arith.constant 2.000000e+01 : f32
      %251 = vector.broadcast %cst_122 : f32 to vector<4x21xf32>
      %252 = arith.cmpf ogt, %250, %251 : vector<4x21xf32>
      %cst_123 = arith.constant 2.000000e+01 : f32
      %253 = vector.broadcast %cst_123 : f32 to vector<4x21xf32>
      %254 = arith.minimumf %250, %253 : vector<4x21xf32>
      %255 = math.exp %254 : vector<4x21xf32>
      %cst_124 = arith.constant 1.000000e+00 : f32
      %256 = vector.broadcast %cst_124 : f32 to vector<4x21xf32>
      %257 = arith.addf %256, %255 : vector<4x21xf32>
      %258 = math.log %257 : vector<4x21xf32>
      %cst_125 = arith.constant 1.000000e+00 : f32
      %259 = vector.broadcast %cst_125 : f32 to vector<4x21xf32>
      %260 = arith.divf %258, %259 : vector<4x21xf32>
      %261 = arith.select %252, %248, %260 : vector<4x21xi1>, vector<4x21xf32>
      %262 = vector.broadcast %16 : vector<1x21xf32> to vector<4x21xf32>
      %263 = arith.mulf %261, %262 : vector<4x21xf32>
      %cst_126 = arith.constant dense<0.000000e+00> : vector<4x54xf32>
      %264 = tpu.matmul %240, %17, %cst_126 {dimension_numbers = #tpu.dot_dimension_numbers<[1], [0], [0], [1], [0, 0, 1, 1], [], []>} : vector<4x21xf32>, vector<21x54xf32>, vector<4x54xf32> -> vector<4x54xf32>
      %cst_127 = arith.constant dense<0.000000e+00> : vector<4x54xf32>
      %265 = tpu.matmul %263, %18, %cst_127 {dimension_numbers = #tpu.dot_dimension_numbers<[1], [0], [0], [1], [0, 0, 1, 1], [], []>} : vector<4x21xf32>, vector<21x54xf32>, vector<4x54xf32> -> vector<4x54xf32>
      %266 = arith.mulf %264, %265 : vector<4x54xf32>
      %cst_128 = arith.constant dense<0.000000e+00> : vector<4x21xf32>
      %267 = tpu.matmul %266, %19, %cst_128 {dimension_numbers = #tpu.dot_dimension_numbers<[1], [0], [0], [1], [0, 0, 1, 1], [], []>} : vector<4x54xf32>, vector<54x21xf32>, vector<4x21xf32> -> vector<4x21xf32>
      %268 = arith.addf %267, %263 : vector<4x21xf32>
      %269 = vector.broadcast %174 : f32 to vector<4x21xf32>
      %270 = arith.mulf %269, %268 : vector<4x21xf32>
      %271 = arith.addf %240, %270 : vector<4x21xf32>
      %272 = vector.broadcast %180 : vector<1x32xf32> to vector<4x32xf32>
      %273 = arith.addf %242, %272 : vector<4x32xf32>
      %cst_129 = arith.constant dense<0.000000e+00> : vector<4x32xf32>
      %274 = tpu.matmul %271, %12, %cst_129 {dimension_numbers = #tpu.dot_dimension_numbers<[1], [0], [0], [1], [0, 0, 1, 1], [], []>} : vector<4x21xf32>, vector<21x32xf32>, vector<4x32xf32> -> vector<4x32xf32>
      %275 = arith.addf %274, %273 : vector<4x32xf32>
      %276 = math.tanh %275 : vector<4x32xf32>
      %cst_130 = arith.constant dense<0.000000e+00> : vector<4x21xf32>
      %277 = tpu.matmul %276, %14, %cst_130 {dimension_numbers = #tpu.dot_dimension_numbers<[1], [0], [0], [1], [0, 0, 1, 1], [], []>} : vector<4x32xf32>, vector<32x21xf32>, vector<4x21xf32> -> vector<4x21xf32>
      %278 = vector.broadcast %15 : vector<1x21xf32> to vector<4x21xf32>
      %279 = arith.addf %277, %278 : vector<4x21xf32>
      %cst_131 = arith.constant 1.000000e+00 : f32
      %280 = vector.broadcast %cst_131 : f32 to vector<4x21xf32>
      %281 = arith.mulf %280, %279 : vector<4x21xf32>
      %cst_132 = arith.constant 2.000000e+01 : f32
      %282 = vector.broadcast %cst_132 : f32 to vector<4x21xf32>
      %283 = arith.cmpf ogt, %281, %282 : vector<4x21xf32>
      %cst_133 = arith.constant 2.000000e+01 : f32
      %284 = vector.broadcast %cst_133 : f32 to vector<4x21xf32>
      %285 = arith.minimumf %281, %284 : vector<4x21xf32>
      %286 = math.exp %285 : vector<4x21xf32>
      %cst_134 = arith.constant 1.000000e+00 : f32
      %287 = vector.broadcast %cst_134 : f32 to vector<4x21xf32>
      %288 = arith.addf %287, %286 : vector<4x21xf32>
      %289 = math.log %288 : vector<4x21xf32>
      %cst_135 = arith.constant 1.000000e+00 : f32
      %290 = vector.broadcast %cst_135 : f32 to vector<4x21xf32>
      %291 = arith.divf %289, %290 : vector<4x21xf32>
      %292 = arith.select %283, %279, %291 : vector<4x21xi1>, vector<4x21xf32>
      %293 = vector.broadcast %16 : vector<1x21xf32> to vector<4x21xf32>
      %294 = arith.mulf %292, %293 : vector<4x21xf32>
      %cst_136 = arith.constant dense<0.000000e+00> : vector<4x54xf32>
      %295 = tpu.matmul %271, %17, %cst_136 {dimension_numbers = #tpu.dot_dimension_numbers<[1], [0], [0], [1], [0, 0, 1, 1], [], []>} : vector<4x21xf32>, vector<21x54xf32>, vector<4x54xf32> -> vector<4x54xf32>
      %cst_137 = arith.constant dense<0.000000e+00> : vector<4x54xf32>
      %296 = tpu.matmul %294, %18, %cst_137 {dimension_numbers = #tpu.dot_dimension_numbers<[1], [0], [0], [1], [0, 0, 1, 1], [], []>} : vector<4x21xf32>, vector<21x54xf32>, vector<4x54xf32> -> vector<4x54xf32>
      %297 = arith.mulf %295, %296 : vector<4x54xf32>
      %cst_138 = arith.constant dense<0.000000e+00> : vector<4x21xf32>
      %298 = tpu.matmul %297, %19, %cst_138 {dimension_numbers = #tpu.dot_dimension_numbers<[1], [0], [0], [1], [0, 0, 1, 1], [], []>} : vector<4x54xf32>, vector<54x21xf32>, vector<4x21xf32> -> vector<4x21xf32>
      %299 = arith.addf %298, %294 : vector<4x21xf32>
      %300 = vector.broadcast %174 : f32 to vector<4x21xf32>
      %301 = arith.mulf %300, %299 : vector<4x21xf32>
      %302 = arith.addf %271, %301 : vector<4x21xf32>
      %303 = vector.broadcast %180 : vector<1x32xf32> to vector<4x32xf32>
      %304 = arith.addf %273, %303 : vector<4x32xf32>
      %cst_139 = arith.constant dense<0.000000e+00> : vector<4x32xf32>
      %305 = tpu.matmul %302, %12, %cst_139 {dimension_numbers = #tpu.dot_dimension_numbers<[1], [0], [0], [1], [0, 0, 1, 1], [], []>} : vector<4x21xf32>, vector<21x32xf32>, vector<4x32xf32> -> vector<4x32xf32>
      %306 = arith.addf %305, %304 : vector<4x32xf32>
      %307 = math.tanh %306 : vector<4x32xf32>
      %cst_140 = arith.constant dense<0.000000e+00> : vector<4x21xf32>
      %308 = tpu.matmul %307, %14, %cst_140 {dimension_numbers = #tpu.dot_dimension_numbers<[1], [0], [0], [1], [0, 0, 1, 1], [], []>} : vector<4x32xf32>, vector<32x21xf32>, vector<4x21xf32> -> vector<4x21xf32>
      %309 = vector.broadcast %15 : vector<1x21xf32> to vector<4x21xf32>
      %310 = arith.addf %308, %309 : vector<4x21xf32>
      %cst_141 = arith.constant 1.000000e+00 : f32
      %311 = vector.broadcast %cst_141 : f32 to vector<4x21xf32>
      %312 = arith.mulf %311, %310 : vector<4x21xf32>
      %cst_142 = arith.constant 2.000000e+01 : f32
      %313 = vector.broadcast %cst_142 : f32 to vector<4x21xf32>
      %314 = arith.cmpf ogt, %312, %313 : vector<4x21xf32>
      %cst_143 = arith.constant 2.000000e+01 : f32
      %315 = vector.broadcast %cst_143 : f32 to vector<4x21xf32>
      %316 = arith.minimumf %312, %315 : vector<4x21xf32>
      %317 = math.exp %316 : vector<4x21xf32>
      %cst_144 = arith.constant 1.000000e+00 : f32
      %318 = vector.broadcast %cst_144 : f32 to vector<4x21xf32>
      %319 = arith.addf %318, %317 : vector<4x21xf32>
      %320 = math.log %319 : vector<4x21xf32>
      %cst_145 = arith.constant 1.000000e+00 : f32
      %321 = vector.broadcast %cst_145 : f32 to vector<4x21xf32>
      %322 = arith.divf %320, %321 : vector<4x21xf32>
      %323 = arith.select %314, %310, %322 : vector<4x21xi1>, vector<4x21xf32>
      %324 = vector.broadcast %16 : vector<1x21xf32> to vector<4x21xf32>
      %325 = arith.mulf %323, %324 : vector<4x21xf32>
      %cst_146 = arith.constant dense<0.000000e+00> : vector<4x54xf32>
      %326 = tpu.matmul %302, %17, %cst_146 {dimension_numbers = #tpu.dot_dimension_numbers<[1], [0], [0], [1], [0, 0, 1, 1], [], []>} : vector<4x21xf32>, vector<21x54xf32>, vector<4x54xf32> -> vector<4x54xf32>
      %cst_147 = arith.constant dense<0.000000e+00> : vector<4x54xf32>
      %327 = tpu.matmul %325, %18, %cst_147 {dimension_numbers = #tpu.dot_dimension_numbers<[1], [0], [0], [1], [0, 0, 1, 1], [], []>} : vector<4x21xf32>, vector<21x54xf32>, vector<4x54xf32> -> vector<4x54xf32>
      %328 = arith.mulf %326, %327 : vector<4x54xf32>
      %cst_148 = arith.constant dense<0.000000e+00> : vector<4x21xf32>
      %329 = tpu.matmul %328, %19, %cst_148 {dimension_numbers = #tpu.dot_dimension_numbers<[1], [0], [0], [1], [0, 0, 1, 1], [], []>} : vector<4x54xf32>, vector<54x21xf32>, vector<4x21xf32> -> vector<4x21xf32>
      %330 = arith.addf %329, %325 : vector<4x21xf32>
      %331 = vector.broadcast %174 : f32 to vector<4x21xf32>
      %332 = arith.mulf %331, %330 : vector<4x21xf32>
      %333 = arith.addf %302, %332 : vector<4x21xf32>
      %334 = vector.broadcast %180 : vector<1x32xf32> to vector<4x32xf32>
      %335 = arith.addf %304, %334 : vector<4x32xf32>
      %cst_149 = arith.constant dense<0.000000e+00> : vector<4x32xf32>
      %336 = tpu.matmul %333, %12, %cst_149 {dimension_numbers = #tpu.dot_dimension_numbers<[1], [0], [0], [1], [0, 0, 1, 1], [], []>} : vector<4x21xf32>, vector<21x32xf32>, vector<4x32xf32> -> vector<4x32xf32>
      %337 = arith.addf %336, %335 : vector<4x32xf32>
      %338 = math.tanh %337 : vector<4x32xf32>
      %cst_150 = arith.constant dense<0.000000e+00> : vector<4x21xf32>
      %339 = tpu.matmul %338, %14, %cst_150 {dimension_numbers = #tpu.dot_dimension_numbers<[1], [0], [0], [1], [0, 0, 1, 1], [], []>} : vector<4x32xf32>, vector<32x21xf32>, vector<4x21xf32> -> vector<4x21xf32>
      %340 = vector.broadcast %15 : vector<1x21xf32> to vector<4x21xf32>
      %341 = arith.addf %339, %340 : vector<4x21xf32>
      %cst_151 = arith.constant 1.000000e+00 : f32
      %342 = vector.broadcast %cst_151 : f32 to vector<4x21xf32>
      %343 = arith.mulf %342, %341 : vector<4x21xf32>
      %cst_152 = arith.constant 2.000000e+01 : f32
      %344 = vector.broadcast %cst_152 : f32 to vector<4x21xf32>
      %345 = arith.cmpf ogt, %343, %344 : vector<4x21xf32>
      %cst_153 = arith.constant 2.000000e+01 : f32
      %346 = vector.broadcast %cst_153 : f32 to vector<4x21xf32>
      %347 = arith.minimumf %343, %346 : vector<4x21xf32>
      %348 = math.exp %347 : vector<4x21xf32>
      %cst_154 = arith.constant 1.000000e+00 : f32
      %349 = vector.broadcast %cst_154 : f32 to vector<4x21xf32>
      %350 = arith.addf %349, %348 : vector<4x21xf32>
      %351 = math.log %350 : vector<4x21xf32>
      %cst_155 = arith.constant 1.000000e+00 : f32
      %352 = vector.broadcast %cst_155 : f32 to vector<4x21xf32>
      %353 = arith.divf %351, %352 : vector<4x21xf32>
      %354 = arith.select %345, %341, %353 : vector<4x21xi1>, vector<4x21xf32>
      %355 = vector.broadcast %16 : vector<1x21xf32> to vector<4x21xf32>
      %356 = arith.mulf %354, %355 : vector<4x21xf32>
      %cst_156 = arith.constant dense<0.000000e+00> : vector<4x54xf32>
      %357 = tpu.matmul %333, %17, %cst_156 {dimension_numbers = #tpu.dot_dimension_numbers<[1], [0], [0], [1], [0, 0, 1, 1], [], []>} : vector<4x21xf32>, vector<21x54xf32>, vector<4x54xf32> -> vector<4x54xf32>
      %cst_157 = arith.constant dense<0.000000e+00> : vector<4x54xf32>
      %358 = tpu.matmul %356, %18, %cst_157 {dimension_numbers = #tpu.dot_dimension_numbers<[1], [0], [0], [1], [0, 0, 1, 1], [], []>} : vector<4x21xf32>, vector<21x54xf32>, vector<4x54xf32> -> vector<4x54xf32>
      %359 = arith.mulf %357, %358 : vector<4x54xf32>
      %cst_158 = arith.constant dense<0.000000e+00> : vector<4x21xf32>
      %360 = tpu.matmul %359, %19, %cst_158 {dimension_numbers = #tpu.dot_dimension_numbers<[1], [0], [0], [1], [0, 0, 1, 1], [], []>} : vector<4x54xf32>, vector<54x21xf32>, vector<4x21xf32> -> vector<4x21xf32>
      %361 = arith.addf %360, %356 : vector<4x21xf32>
      %362 = vector.broadcast %174 : f32 to vector<4x21xf32>
      %363 = arith.mulf %362, %361 : vector<4x21xf32>
      %364 = arith.addf %333, %363 : vector<4x21xf32>
      %365 = vector.broadcast %180 : vector<1x32xf32> to vector<4x32xf32>
      %366 = arith.addf %335, %365 : vector<4x32xf32>
      %cst_159 = arith.constant dense<0.000000e+00> : vector<4x32xf32>
      %367 = tpu.matmul %364, %12, %cst_159 {dimension_numbers = #tpu.dot_dimension_numbers<[1], [0], [0], [1], [0, 0, 1, 1], [], []>} : vector<4x21xf32>, vector<21x32xf32>, vector<4x32xf32> -> vector<4x32xf32>
      %368 = arith.addf %367, %366 : vector<4x32xf32>
      %369 = math.tanh %368 : vector<4x32xf32>
      %cst_160 = arith.constant dense<0.000000e+00> : vector<4x21xf32>
      %370 = tpu.matmul %369, %14, %cst_160 {dimension_numbers = #tpu.dot_dimension_numbers<[1], [0], [0], [1], [0, 0, 1, 1], [], []>} : vector<4x32xf32>, vector<32x21xf32>, vector<4x21xf32> -> vector<4x21xf32>
      %371 = vector.broadcast %15 : vector<1x21xf32> to vector<4x21xf32>
      %372 = arith.addf %370, %371 : vector<4x21xf32>
      %cst_161 = arith.constant 1.000000e+00 : f32
      %373 = vector.broadcast %cst_161 : f32 to vector<4x21xf32>
      %374 = arith.mulf %373, %372 : vector<4x21xf32>
      %cst_162 = arith.constant 2.000000e+01 : f32
      %375 = vector.broadcast %cst_162 : f32 to vector<4x21xf32>
      %376 = arith.cmpf ogt, %374, %375 : vector<4x21xf32>
      %cst_163 = arith.constant 2.000000e+01 : f32
      %377 = vector.broadcast %cst_163 : f32 to vector<4x21xf32>
      %378 = arith.minimumf %374, %377 : vector<4x21xf32>
      %379 = math.exp %378 : vector<4x21xf32>
      %cst_164 = arith.constant 1.000000e+00 : f32
      %380 = vector.broadcast %cst_164 : f32 to vector<4x21xf32>
      %381 = arith.addf %380, %379 : vector<4x21xf32>
      %382 = math.log %381 : vector<4x21xf32>
      %cst_165 = arith.constant 1.000000e+00 : f32
      %383 = vector.broadcast %cst_165 : f32 to vector<4x21xf32>
      %384 = arith.divf %382, %383 : vector<4x21xf32>
      %385 = arith.select %376, %372, %384 : vector<4x21xi1>, vector<4x21xf32>
      %386 = vector.broadcast %16 : vector<1x21xf32> to vector<4x21xf32>
      %387 = arith.mulf %385, %386 : vector<4x21xf32>
      %cst_166 = arith.constant dense<0.000000e+00> : vector<4x54xf32>
      %388 = tpu.matmul %364, %17, %cst_166 {dimension_numbers = #tpu.dot_dimension_numbers<[1], [0], [0], [1], [0, 0, 1, 1], [], []>} : vector<4x21xf32>, vector<21x54xf32>, vector<4x54xf32> -> vector<4x54xf32>
      %cst_167 = arith.constant dense<0.000000e+00> : vector<4x54xf32>
      %389 = tpu.matmul %387, %18, %cst_167 {dimension_numbers = #tpu.dot_dimension_numbers<[1], [0], [0], [1], [0, 0, 1, 1], [], []>} : vector<4x21xf32>, vector<21x54xf32>, vector<4x54xf32> -> vector<4x54xf32>
      %390 = arith.mulf %388, %389 : vector<4x54xf32>
      %cst_168 = arith.constant dense<0.000000e+00> : vector<4x21xf32>
      %391 = tpu.matmul %390, %19, %cst_168 {dimension_numbers = #tpu.dot_dimension_numbers<[1], [0], [0], [1], [0, 0, 1, 1], [], []>} : vector<4x54xf32>, vector<54x21xf32>, vector<4x21xf32> -> vector<4x21xf32>
      %392 = arith.addf %391, %387 : vector<4x21xf32>
      %393 = vector.broadcast %174 : f32 to vector<4x21xf32>
      %394 = arith.mulf %393, %392 : vector<4x21xf32>
      %395 = arith.addf %364, %394 : vector<4x21xf32>
      %396 = vector.broadcast %180 : vector<1x32xf32> to vector<4x32xf32>
      %397 = arith.addf %366, %396 : vector<4x32xf32>
      %cst_169 = arith.constant dense<0.000000e+00> : vector<4x32xf32>
      %398 = tpu.matmul %395, %12, %cst_169 {dimension_numbers = #tpu.dot_dimension_numbers<[1], [0], [0], [1], [0, 0, 1, 1], [], []>} : vector<4x21xf32>, vector<21x32xf32>, vector<4x32xf32> -> vector<4x32xf32>
      %399 = arith.addf %398, %397 : vector<4x32xf32>
      %400 = math.tanh %399 : vector<4x32xf32>
      %cst_170 = arith.constant dense<0.000000e+00> : vector<4x21xf32>
      %401 = tpu.matmul %400, %14, %cst_170 {dimension_numbers = #tpu.dot_dimension_numbers<[1], [0], [0], [1], [0, 0, 1, 1], [], []>} : vector<4x32xf32>, vector<32x21xf32>, vector<4x21xf32> -> vector<4x21xf32>
      %402 = vector.broadcast %15 : vector<1x21xf32> to vector<4x21xf32>
      %403 = arith.addf %401, %402 : vector<4x21xf32>
      %cst_171 = arith.constant 1.000000e+00 : f32
      %404 = vector.broadcast %cst_171 : f32 to vector<4x21xf32>
      %405 = arith.mulf %404, %403 : vector<4x21xf32>
      %cst_172 = arith.constant 2.000000e+01 : f32
      %406 = vector.broadcast %cst_172 : f32 to vector<4x21xf32>
      %407 = arith.cmpf ogt, %405, %406 : vector<4x21xf32>
      %cst_173 = arith.constant 2.000000e+01 : f32
      %408 = vector.broadcast %cst_173 : f32 to vector<4x21xf32>
      %409 = arith.minimumf %405, %408 : vector<4x21xf32>
      %410 = math.exp %409 : vector<4x21xf32>
      %cst_174 = arith.constant 1.000000e+00 : f32
      %411 = vector.broadcast %cst_174 : f32 to vector<4x21xf32>
      %412 = arith.addf %411, %410 : vector<4x21xf32>
      %413 = math.log %412 : vector<4x21xf32>
      %cst_175 = arith.constant 1.000000e+00 : f32
      %414 = vector.broadcast %cst_175 : f32 to vector<4x21xf32>
      %415 = arith.divf %413, %414 : vector<4x21xf32>
      %416 = arith.select %407, %403, %415 : vector<4x21xi1>, vector<4x21xf32>
      %417 = vector.broadcast %16 : vector<1x21xf32> to vector<4x21xf32>
      %418 = arith.mulf %416, %417 : vector<4x21xf32>
      %cst_176 = arith.constant dense<0.000000e+00> : vector<4x54xf32>
      %419 = tpu.matmul %395, %17, %cst_176 {dimension_numbers = #tpu.dot_dimension_numbers<[1], [0], [0], [1], [0, 0, 1, 1], [], []>} : vector<4x21xf32>, vector<21x54xf32>, vector<4x54xf32> -> vector<4x54xf32>
      %cst_177 = arith.constant dense<0.000000e+00> : vector<4x54xf32>
      %420 = tpu.matmul %418, %18, %cst_177 {dimension_numbers = #tpu.dot_dimension_numbers<[1], [0], [0], [1], [0, 0, 1, 1], [], []>} : vector<4x21xf32>, vector<21x54xf32>, vector<4x54xf32> -> vector<4x54xf32>
      %421 = arith.mulf %419, %420 : vector<4x54xf32>
      %cst_178 = arith.constant dense<0.000000e+00> : vector<4x21xf32>
      %422 = tpu.matmul %421, %19, %cst_178 {dimension_numbers = #tpu.dot_dimension_numbers<[1], [0], [0], [1], [0, 0, 1, 1], [], []>} : vector<4x54xf32>, vector<54x21xf32>, vector<4x21xf32> -> vector<4x21xf32>
      %423 = arith.addf %422, %418 : vector<4x21xf32>
      %424 = vector.broadcast %174 : f32 to vector<4x21xf32>
      %425 = arith.mulf %424, %423 : vector<4x21xf32>
      %426 = arith.addf %395, %425 : vector<4x21xf32>
      %427 = vector.broadcast %180 : vector<1x32xf32> to vector<4x32xf32>
      %428 = arith.addf %397, %427 : vector<4x32xf32>
      %429 = arith.index_cast %arg30 : i32 to index
      %c0_179 = arith.constant 0 : index
      %c0_180 = arith.constant 0 : index
      %430 = vector.load %arg29[%429, %c0_179, %c0_180] : memref<16x4x21xf32, #tpu.memory_space<vmem>>, vector<1x4x21xf32>
      %431 = vector.shape_cast %430 : vector<1x4x21xf32> to vector<4x21xf32>
      %432 = vector.shape_cast %426 : vector<4x21xf32> to vector<1x4x21xf32>
      tpu.vector_store %arg29[%429, %c0_179, %c0_180], %432 {strides = array<i32>} : memref<16x4x21xf32, #tpu.memory_space<vmem>>, vector<1x4x21xf32>,
      scf.yield %426 : vector<4x21xf32>
    }
    %28 = tpu.iota {dimensions = array<i32: 0>} : vector<4x1xi32>
    %cst_33 = arith.constant 0.000000e+00 : f32
    %29 = vector.broadcast %cst_33 : f32 to vector<4x21xf32>
    %cst_34 = arith.constant 0.000000e+00 : f32
    %30 = vector.broadcast %cst_34 : f32 to vector<4x21xf32>
    %c0_i32 = arith.constant 0 : i32
    %31 = vector.broadcast %c0_i32 : i32 to vector<4x1xi32>
    %32 = arith.cmpi eq, %28, %31 : vector<4x1xi32>
    %33 = arith.extui %32 : vector<4x1xi1> to vector<4x1xi32>
    %34 = arith.sitofp %33 : vector<4x1xi32> to vector<4x1xf32>
    %c0_35 = arith.constant 0 : index
    %35 = memref.load %arg2[%c0_35] : memref<4xi32, #tpu.memory_space<smem>>
    %36 = arith.index_cast %35 : i32 to index
    %c0_36 = arith.constant 0 : index
    %c0_37 = arith.constant 0 : index
    %37 = vector.load %arg29[%36, %c0_36, %c0_37] : memref<16x4x21xf32, #tpu.memory_space<vmem>>, vector<1x4x21xf32>
    %38 = vector.shape_cast %37 : vector<1x4x21xf32> to vector<4x21xf32>
    %39 = vector.broadcast %34 : vector<4x1xf32> to vector<4x21xf32>
    %40 = arith.mulf %39, %38 : vector<4x21xf32>
    %41 = arith.addf %29, %40 : vector<4x21xf32>
    %c0_38 = arith.constant 0 : index
    %42 = memref.load %arg3[%c0_38] : memref<4xi32, #tpu.memory_space<smem>>
    %43 = arith.index_cast %42 : i32 to index
    %c0_39 = arith.constant 0 : index
    %c0_40 = arith.constant 0 : index
    %44 = vector.load %arg29[%43, %c0_39, %c0_40] : memref<16x4x21xf32, #tpu.memory_space<vmem>>, vector<1x4x21xf32>
    %45 = vector.shape_cast %44 : vector<1x4x21xf32> to vector<4x21xf32>
    %46 = vector.broadcast %34 : vector<4x1xf32> to vector<4x21xf32>
    %47 = arith.mulf %46, %45 : vector<4x21xf32>
    %48 = arith.addf %30, %47 : vector<4x21xf32>
    %c1_i32_41 = arith.constant 1 : i32
    %49 = vector.broadcast %c1_i32_41 : i32 to vector<4x1xi32>
    %50 = arith.cmpi eq, %28, %49 : vector<4x1xi32>
    %51 = arith.extui %50 : vector<4x1xi1> to vector<4x1xi32>
    %52 = arith.sitofp %51 : vector<4x1xi32> to vector<4x1xf32>
    %c1 = arith.constant 1 : index
    %53 = memref.load %arg2[%c1] : memref<4xi32, #tpu.memory_space<smem>>
    %54 = arith.index_cast %53 : i32 to index
    %c0_42 = arith.constant 0 : index
    %c0_43 = arith.constant 0 : index
    %55 = vector.load %arg29[%54, %c0_42, %c0_43] : memref<16x4x21xf32, #tpu.memory_space<vmem>>, vector<1x4x21xf32>
    %56 = vector.shape_cast %55 : vector<1x4x21xf32> to vector<4x21xf32>
    %57 = vector.broadcast %52 : vector<4x1xf32> to vector<4x21xf32>
    %58 = arith.mulf %57, %56 : vector<4x21xf32>
    %59 = arith.addf %41, %58 : vector<4x21xf32>
    %c1_44 = arith.constant 1 : index
    %60 = memref.load %arg3[%c1_44] : memref<4xi32, #tpu.memory_space<smem>>
    %61 = arith.index_cast %60 : i32 to index
    %c0_45 = arith.constant 0 : index
    %c0_46 = arith.constant 0 : index
    %62 = vector.load %arg29[%61, %c0_45, %c0_46] : memref<16x4x21xf32, #tpu.memory_space<vmem>>, vector<1x4x21xf32>
    %63 = vector.shape_cast %62 : vector<1x4x21xf32> to vector<4x21xf32>
    %64 = vector.broadcast %52 : vector<4x1xf32> to vector<4x21xf32>
    %65 = arith.mulf %64, %63 : vector<4x21xf32>
    %66 = arith.addf %48, %65 : vector<4x21xf32>
    %c2_i32 = arith.constant 2 : i32
    %67 = vector.broadcast %c2_i32 : i32 to vector<4x1xi32>
    %68 = arith.cmpi eq, %28, %67 : vector<4x1xi32>
    %69 = arith.extui %68 : vector<4x1xi1> to vector<4x1xi32>
    %70 = arith.sitofp %69 : vector<4x1xi32> to vector<4x1xf32>
    %c2 = arith.constant 2 : index
    %71 = memref.load %arg2[%c2] : memref<4xi32, #tpu.memory_space<smem>>
    %72 = arith.index_cast %71 : i32 to index
    %c0_47 = arith.constant 0 : index
    %c0_48 = arith.constant 0 : index
    %73 = vector.load %arg29[%72, %c0_47, %c0_48] : memref<16x4x21xf32, #tpu.memory_space<vmem>>, vector<1x4x21xf32>
    %74 = vector.shape_cast %73 : vector<1x4x21xf32> to vector<4x21xf32>
    %75 = vector.broadcast %70 : vector<4x1xf32> to vector<4x21xf32>
    %76 = arith.mulf %75, %74 : vector<4x21xf32>
    %77 = arith.addf %59, %76 : vector<4x21xf32>
    %c2_49 = arith.constant 2 : index
    %78 = memref.load %arg3[%c2_49] : memref<4xi32, #tpu.memory_space<smem>>
    %79 = arith.index_cast %78 : i32 to index
    %c0_50 = arith.constant 0 : index
    %c0_51 = arith.constant 0 : index
    %80 = vector.load %arg29[%79, %c0_50, %c0_51] : memref<16x4x21xf32, #tpu.memory_space<vmem>>, vector<1x4x21xf32>
    %81 = vector.shape_cast %80 : vector<1x4x21xf32> to vector<4x21xf32>
    %82 = vector.broadcast %70 : vector<4x1xf32> to vector<4x21xf32>
    %83 = arith.mulf %82, %81 : vector<4x21xf32>
    %84 = arith.addf %66, %83 : vector<4x21xf32>
    %c3_i32 = arith.constant 3 : i32
    %85 = vector.broadcast %c3_i32 : i32 to vector<4x1xi32>
    %86 = arith.cmpi eq, %28, %85 : vector<4x1xi32>
    %87 = arith.extui %86 : vector<4x1xi1> to vector<4x1xi32>
    %88 = arith.sitofp %87 : vector<4x1xi32> to vector<4x1xf32>
    %c3 = arith.constant 3 : index
    %89 = memref.load %arg2[%c3] : memref<4xi32, #tpu.memory_space<smem>>
    %90 = arith.index_cast %89 : i32 to index
    %c0_52 = arith.constant 0 : index
    %c0_53 = arith.constant 0 : index
    %91 = vector.load %arg29[%90, %c0_52, %c0_53] : memref<16x4x21xf32, #tpu.memory_space<vmem>>, vector<1x4x21xf32>
    %92 = vector.shape_cast %91 : vector<1x4x21xf32> to vector<4x21xf32>
    %93 = vector.broadcast %88 : vector<4x1xf32> to vector<4x21xf32>
    %94 = arith.mulf %93, %92 : vector<4x21xf32>
    %95 = arith.addf %77, %94 : vector<4x21xf32>
    %c3_54 = arith.constant 3 : index
    %96 = memref.load %arg3[%c3_54] : memref<4xi32, #tpu.memory_space<smem>>
    %97 = arith.index_cast %96 : i32 to index
    %c0_55 = arith.constant 0 : index
    %c0_56 = arith.constant 0 : index
    %98 = vector.load %arg29[%97, %c0_55, %c0_56] : memref<16x4x21xf32, #tpu.memory_space<vmem>>, vector<1x4x21xf32>
    %99 = vector.shape_cast %98 : vector<1x4x21xf32> to vector<4x21xf32>
    %100 = vector.broadcast %88 : vector<4x1xf32> to vector<4x21xf32>
    %101 = arith.mulf %100, %99 : vector<4x21xf32>
    %102 = arith.addf %84, %101 : vector<4x21xf32>
    %c0_57 = arith.constant 0 : index
    %c0_58 = arith.constant 0 : index
    %103 = vector.load %arg19[%c0_57, %c0_58] : memref<21x27xf32, #tpu.memory_space<vmem>>, vector<21x27xf32>
    %cst_59 = arith.constant dense<0.000000e+00> : vector<4x27xf32>
    %104 = tpu.matmul %95, %103, %cst_59 {dimension_numbers = #tpu.dot_dimension_numbers<[1], [0], [0], [1], [0, 0, 1, 1], [], []>} : vector<4x21xf32>, vector<21x27xf32>, vector<4x27xf32> -> vector<4x27xf32>
    %c0_60 = arith.constant 0 : index
    %c0_61 = arith.constant 0 : index
    %105 = vector.load %arg20[%c0_60, %c0_61] : memref<21x27xf32, #tpu.memory_space<vmem>>, vector<21x27xf32>
    %cst_62 = arith.constant dense<0.000000e+00> : vector<4x27xf32>
    %106 = tpu.matmul %102, %105, %cst_62 {dimension_numbers = #tpu.dot_dimension_numbers<[1], [0], [0], [1], [0, 0, 1, 1], [], []>} : vector<4x21xf32>, vector<21x27xf32>, vector<4x27xf32> -> vector<4x27xf32>
    %107 = arith.mulf %104, %106 : vector<4x27xf32>
    %c0_63 = arith.constant 0 : index
    %c0_64 = arith.constant 0 : index
    %108 = vector.load %arg21[%c0_63, %c0_64] : memref<27x9xf32, #tpu.memory_space<vmem>>, vector<27x9xf32>
    %cst_65 = arith.constant dense<0.000000e+00> : vector<4x9xf32>
    %109 = tpu.matmul %107, %108, %cst_65 {dimension_numbers = #tpu.dot_dimension_numbers<[1], [0], [0], [1], [0, 0, 1, 1], [], []>} : vector<4x27xf32>, vector<27x9xf32>, vector<4x9xf32> -> vector<4x9xf32>
    %c0_66 = arith.constant 0 : index
    %c0_67 = arith.constant 0 : index
    %110 = vector.load %arg22[%c0_66, %c0_67] : memref<4x9xf32, #tpu.memory_space<vmem>>, vector<4x9xf32>
    %111 = arith.mulf %109, %110 : vector<4x9xf32>
    %cst_68 = arith.constant dense<0.000000e+00> : vector<4xf32>
    %112 = vector.multi_reduction <add>, %111, %cst_68 [1] : vector<4x9xf32> to vector<4xf32>
    %113 = vector.shape_cast %112 : vector<4xf32> to vector<4x1xf32>
    %c0_69 = arith.constant 0 : index
    %c0_70 = arith.constant 0 : index
    %114 = vector.load %arg26[%c0_69, %c0_70] : memref<4x1xf32, #tpu.memory_space<vmem>>, vector<4x1xf32>
    tpu.vector_store %arg26[%c0_69, %c0_70], %113 {strides = array<i32>} : memref<4x1xf32, #tpu.memory_space<vmem>>, vector<4x1xf32>,
    %115 = tpu.concatenate %102, %27 in 0 : vector<4x21xf32>, vector<4x21xf32> -> vector<8x21xf32>
    %116 = tpu.concatenate %11, %11 in 0 : vector<4x32xf32>, vector<4x32xf32> -> vector<8x32xf32>
    %cst_71 = arith.constant dense<0.000000e+00> : vector<8x32xf32>
    %117 = tpu.matmul %115, %12, %cst_71 {dimension_numbers = #tpu.dot_dimension_numbers<[1], [0], [0], [1], [0, 0, 1, 1], [], []>} : vector<8x21xf32>, vector<21x32xf32>, vector<8x32xf32> -> vector<8x32xf32>
    %118 = arith.addf %117, %116 : vector<8x32xf32>
    %c0_72 = arith.constant 0 : index
    %c0_73 = arith.constant 0 : index
    %119 = vector.load %arg24[%c0_72, %c0_73] : memref<8x1xf32, #tpu.memory_space<vmem>>, vector<8x1xf32>
    %120 = vector.broadcast %119 : vector<8x1xf32> to vector<8x32xf32>
    %121 = vector.broadcast %13 : vector<1x32xf32> to vector<8x32xf32>
    %122 = arith.mulf %120, %121 : vector<8x32xf32>
    %123 = arith.addf %118, %122 : vector<8x32xf32>
    %124 = math.tanh %123 : vector<8x32xf32>
    %c0_74 = arith.constant 0 : index
    %c0_75 = arith.constant 0 : index
    %125 = vector.load %arg11[%c0_74, %c0_75] : memref<32x6xf32, #tpu.memory_space<vmem>>, vector<32x6xf32>
    %cst_76 = arith.constant dense<0.000000e+00> : vector<8x6xf32>
    %126 = tpu.matmul %124, %125, %cst_76 {dimension_numbers = #tpu.dot_dimension_numbers<[1], [0], [0], [1], [0, 0, 1, 1], [], []>} : vector<8x32xf32>, vector<32x6xf32>, vector<8x6xf32> -> vector<8x6xf32>
    %c0_77 = arith.constant 0 : index
    %c0_78 = arith.constant 0 : index
    %127 = vector.load %arg12[%c0_77, %c0_78] : memref<1x6xf32, #tpu.memory_space<vmem>>, vector<1x6xf32>
    %128 = vector.broadcast %127 : vector<1x6xf32> to vector<8x6xf32>
    %129 = arith.addf %126, %128 : vector<8x6xf32>
    %130 = vector.extract_strided_slice %129 {offsets = [0, 0], sizes = [4, 6], strides = [1, 1]} : vector<8x6xf32> to vector<4x6xf32>
    %131 = vector.extract_strided_slice %129 {offsets = [4, 0], sizes = [4, 6], strides = [1, 1]} : vector<8x6xf32> to vector<4x6xf32>
    %cst_79 = arith.constant 1.000000e+00 : f32
    %132 = vector.broadcast %cst_79 : f32 to vector<4x6xf32>
    %133 = arith.mulf %132, %130 : vector<4x6xf32>
    %cst_80 = arith.constant 2.000000e+01 : f32
    %134 = vector.broadcast %cst_80 : f32 to vector<4x6xf32>
    %135 = arith.cmpf ogt, %133, %134 : vector<4x6xf32>
    %cst_81 = arith.constant 2.000000e+01 : f32
    %136 = vector.broadcast %cst_81 : f32 to vector<4x6xf32>
    %137 = arith.minimumf %133, %136 : vector<4x6xf32>
    %138 = math.exp %137 : vector<4x6xf32>
    %cst_82 = arith.constant 1.000000e+00 : f32
    %139 = vector.broadcast %cst_82 : f32 to vector<4x6xf32>
    %140 = arith.addf %139, %138 : vector<4x6xf32>
    %141 = math.log %140 : vector<4x6xf32>
    %cst_83 = arith.constant 1.000000e+00 : f32
    %142 = vector.broadcast %cst_83 : f32 to vector<4x6xf32>
    %143 = arith.divf %141, %142 : vector<4x6xf32>
    %144 = arith.select %135, %130, %143 : vector<4x6xi1>, vector<4x6xf32>
    %c0_84 = arith.constant 0 : index
    %c0_85 = arith.constant 0 : index
    %145 = vector.load %arg23[%c0_84, %c0_85] : memref<4x6xf32, #tpu.memory_space<vmem>>, vector<4x6xf32>
    %146 = arith.mulf %144, %145 : vector<4x6xf32>
    %cst_86 = arith.constant dense<0.000000e+00> : vector<4xf32>
    %147 = vector.multi_reduction <add>, %146, %cst_86 [1] : vector<4x6xf32> to vector<4xf32>
    %148 = vector.shape_cast %147 : vector<4xf32> to vector<4x1xf32>
    %c0_87 = arith.constant 0 : index
    %c0_88 = arith.constant 0 : index
    %149 = vector.load %arg27[%c0_87, %c0_88] : memref<4x1xf32, #tpu.memory_space<vmem>>, vector<4x1xf32>
    tpu.vector_store %arg27[%c0_87, %c0_88], %148 {strides = array<i32>} : memref<4x1xf32, #tpu.memory_space<vmem>>, vector<4x1xf32>,
    %150 = tpu.iota {dimensions = array<i32: 1>} : vector<4x6xi32>
    %c3_i32_89 = arith.constant 3 : i32
    %151 = vector.broadcast %c3_i32_89 : i32 to vector<4x6xi32>
    %152 = arith.cmpi slt, %150, %151 : vector<4x6xi32>
    %cst_90 = arith.constant 1.000000e+00 : f32
    %153 = vector.broadcast %cst_90 : f32 to vector<4x6xf32>
    %154 = arith.mulf %153, %131 : vector<4x6xf32>
    %cst_91 = arith.constant 2.000000e+01 : f32
    %155 = vector.broadcast %cst_91 : f32 to vector<4x6xf32>
    %156 = arith.cmpf ogt, %154, %155 : vector<4x6xf32>
    %cst_92 = arith.constant 2.000000e+01 : f32
    %157 = vector.broadcast %cst_92 : f32 to vector<4x6xf32>
    %158 = arith.minimumf %154, %157 : vector<4x6xf32>
    %159 = math.exp %158 : vector<4x6xf32>
    %cst_93 = arith.constant 1.000000e+00 : f32
    %160 = vector.broadcast %cst_93 : f32 to vector<4x6xf32>
    %161 = arith.addf %160, %159 : vector<4x6xf32>
    %162 = math.log %161 : vector<4x6xf32>
    %cst_94 = arith.constant 1.000000e+00 : f32
    %163 = vector.broadcast %cst_94 : f32 to vector<4x6xf32>
    %164 = arith.divf %162, %163 : vector<4x6xf32>
    %165 = arith.select %156, %131, %164 : vector<4x6xi1>, vector<4x6xf32>
    %166 = arith.select %152, %165, %131 : vector<4x6xi1>, vector<4x6xf32>
    %c0_95 = arith.constant 0 : index
    %c0_96 = arith.constant 0 : index
    %167 = vector.load %arg28[%c0_95, %c0_96] : memref<4x6xf32, #tpu.memory_space<vmem>>, vector<4x6xf32>
    tpu.vector_store %arg28[%c0_95, %c0_96], %166 {strides = array<i32>} : memref<4x6xf32, #tpu.memory_space<vmem>>, vector<4x6xf32>,
    return
  }
}

</mosaic_0001>

<bundles_post_ra>
// kernel: tpu_custom_call.1
= control target key start
LH: loop header
LB: loop body
LE: loop exit
PB: predicated region body
PF: predicated region fallthrough
CT: control target
= control target key end

     0   :  { %s6036_s0 = inlined_call_operand.<no memory space> [shape: s32[1], index: 0, kind: input, shape index: {}]   ;;  %s6037_s1 = inlined_call_operand.vmem [shape: f32[16], index: 1, kind: input, shape index: {}]   ;;  %s6038_s2 = inlined_call_operand.vmem [shape: s32[4], index: 2, kind: input, shape index: {}]   ;;  %s6039_s3 = inlined_call_operand.vmem [shape: s32[4], index: 3, kind: input, shape index: {}]   ;;  %s6040_s4 = inlined_call_operand.vmem [shape: f32[4,8], index: 4, kind: input, shape index: {}]   ;;  %s6041_s5 = inlined_call_operand.vmem [shape: f32[8,16], index: 5, kind: input, shape index: {}]   ;;  %s6042_s6 = inlined_call_operand.vmem [shape: f32[1,16], index: 6, kind: input, shape index: {}]   ;;  %s6043_s7 = inlined_call_operand.vmem [shape: f32[21,32], index: 7, kind: input, shape index: {}]   ;;  %s6044_s8 = inlined_call_operand.vmem [shape: f32[16,32], index: 8, kind: input, shape index: {}]   ;;  %s6045_s9 = inlined_call_operand.vmem [shape: f32[1,32], index: 9, kind: input, shape index: {}]   ;;  %s6046_s10 = inlined_call_operand.vmem [shape: f32[1,32], index: 10, kind: input, shape index: {}]   ;;  %s6047_s11 = inlined_call_operand.vmem [shape: f32[32,6], index: 11, kind: input, shape index: {}]   ;;  %s6048_s12 = inlined_call_operand.vmem [shape: f32[1,6], index: 12, kind: input, shape index: {}]   ;;  %s6049_s13 = inlined_call_operand.vmem [shape: f32[32,21], index: 13, kind: input, shape index: {}]   ;;  %s6050_s14 = inlined_call_operand.vmem [shape: f32[1,21], index: 14, kind: input, shape index: {}]   ;;  %s6051_s15 = inlined_call_operand.vmem [shape: f32[1,21], index: 15, kind: input, shape index: {}]   ;;  %s6052_s16 = inlined_call_operand.vmem [shape: f32[21,54], index: 16, kind: input, shape index: {}]   ;;  %s6053_s17 = inlined_call_operand.vmem [shape: f32[21,54], index: 17, kind: input, shape index: {}]   ;;  %s6054_s18 = inlined_call_operand.vmem [shape: f32[54,21], index: 18, kind: input, shape index: {}]   ;;  %s6055_s19 = inlined_call_operand.vmem [shape: f32[21,27], index: 19, kind: input, shape index: {}]   ;;  %s6056_s20 = inlined_call_operand.vmem [shape: f32[21,27], index: 20, kind: input, shape index: {}]   ;;  %s6057_s21 = inlined_call_operand.vmem [shape: f32[27,9], index: 21, kind: input, shape index: {}]   ;;  %s6058_s22 = inlined_call_operand.vmem [shape: f32[4,9], index: 22, kind: input, shape index: {}]   ;;  %s6059_s23 = inlined_call_operand.vmem [shape: f32[4,6], index: 23, kind: input, shape index: {}]   ;;  %s6060_s24 = inlined_call_operand.vmem [shape: f32[8,1], index: 24, kind: input, shape index: {}]   ;;  %s6061_s25 = inlined_call_operand.vmem [shape: f32[4,21], index: 25, kind: input, shape index: {}]   ;;  %s6062_s26 = inlined_call_operand.vmem [shape: f32[4,1], index: 26, kind: output, shape index: {0}]   ;;  %s6063_s27 = inlined_call_operand.vmem [shape: f32[4,1], index: 27, kind: output, shape index: {1}]   ;;  %s6064_s28 = inlined_call_operand.hbm [shape: f32[4,6], index: 28, kind: output, shape index: {2}]  }
   0x1   :  { %6068 = sst [smem:[#allocation14_spill]] %s6036_s0 }
   0x2   :  { %6069 = sst [smem:[#allocation15_spill]] %s6037_s1 }
   0x3   :  { %6070 = sst [smem:[#allocation16_spill]] %s6038_s2 }
   0x4   :  { %6071 = sst [smem:[#allocation17_spill]] %s6039_s3 }
   0x5   :  { %6072 = sst [smem:[#allocation18_spill]] %s6040_s4 }
   0x6   :  { %6073 = sst [smem:[#allocation19_spill]] %s6041_s5 }
   0x7   :  { %6074 = sst [smem:[#allocation20_spill]] %s6042_s6 }
   0x8   :  { %6075 = sst [smem:[#allocation21_spill]] %s6043_s7 }
   0x9   :  { %6076 = sst [smem:[#allocation22_spill]] %s6044_s8 }
   0xa   :  { %6077 = sst [smem:[#allocation23_spill]] %s6045_s9 }
   0xb   :  { %6078 = sst [smem:[#allocation24_spill]] %s6046_s10 }
   0xc   :  { %6079 = sst [smem:[#allocation25_spill]] %s6047_s11 }
   0xd   :  { %6080 = sst [smem:[#allocation26_spill]] %s6048_s12 }
   0xe   :  { %35 = vsyncpa [#allocation6], 0 }
   0xf   :  { %36 = vsyncpa [#allocation8], 0  ;;  %s6081_s9 = sld [smem:[#allocation16_spill]] }
  0x15   :  { %s56_s30 = sshll.u32 %s6081_s9, 4  ;;  %s57_s30 = int_to_ptr.vmem [resolvable:$true] %s56_s30 }
  0x16   :  { %37 = vsyncpa [#allocation5], 0  ;;  %s6082_s10 = sld [smem:[#allocation15_spill]]  ;;  %s4882_s11 = scalar_lea.vmem %s57_s30, 16 }
  0x17   :  { %p4883_p0 = scmp.ne.s32.totalorder %s57_s30, %s4882_s11  ;;  %p4887_p1 = scmp.lt.s32.totalorder %s57_s30, %s57_s30 }
  0x18   :  { %p4888_p2 = scmp.lt.s32.totalorder %s4882_s11, %s4882_s11 }
  0x1a   :  { %p4889_p3 = por %p4888_p2, %p4887_p1 }
  0x1c   :  { %s46_s0 = sshll.u32 %s6082_s10, 4  ;;  %p4890_p4 = pnand %p4889_p3, %p4883_p0  ;;  %s47_s0 = int_to_ptr.vmem [resolvable:$true] %s46_s0 }
  0x1e   :  { %4893 = shalt.err (!%p4890_p4)
}
  0x1f   :  { %s4968_s29 = smov [#allocation7]   ;;  %s4894_s2 = scalar_lea.vmem %s47_s0, 16 }
  0x20   :  { %59 = dma.vmem_to_smem %s57_s30, 16, %s4968_s29, [#allocation8]  }
  0x21   :  { %p4895_p5 = scmp.ne.s32.totalorder %s47_s0, %s4894_s2  ;;  %p4899_p6 = scmp.lt.s32.totalorder %s47_s0, %s47_s0 }
  0x22   :  { %p4900_p7 = scmp.lt.s32.totalorder %s4894_s2, %s4894_s2 }
  0x24   :  { %p4901_p8 = por %p4900_p7, %p4899_p6 }
  0x26   :  { %p4902_p9 = pnand %p4901_p8, %p4895_p5 }
  0x28   :  { %4905 = shalt.err (!%p4902_p9)
}
  0x29   :  { %s4969_s7 = smov [#allocation4]   ;;  %s6083_s4 = sld [smem:[#allocation17_spill]] }
  0x2a   :  { %49 = dma.vmem_to_smem %s47_s0, 16, %s4969_s7, [#allocation6]  }
  0x2f   :  { %s66_s8 = sshll.u32 %s6083_s4, 4  ;;  %s67_s8 = int_to_ptr.vmem [resolvable:$true] %s66_s8 }
  0x30   :  { %s4906_s5 = scalar_lea.vmem %s67_s8, 16  ;;  %p4911_p11 = scmp.lt.s32.totalorder %s67_s8, %s67_s8 }
  0x31   :  { %p4907_p10 = scmp.ne.s32.totalorder %s67_s8, %s4906_s5  ;;  %p4912_p12 = scmp.lt.s32.totalorder %s4906_s5, %s4906_s5 }
  0x33   :  { %p4913_p13 = por %p4912_p12, %p4911_p11 }
  0x35   :  { %p4914_p0 = pnand %p4913_p13, %p4907_p10 }
  0x37   :  { %4917 = shalt.err (!%p4914_p0)
}
  0x38   :  { %s4970_s9 = smov [#allocation9]  }
  0x39   :  { %69 = dma.vmem_to_smem %s67_s8, 16, %s4970_s9, [#allocation8]  }
  0x3a   :  { %4950 = dma.done.wait [#allocation6], 16  }
  0x3b   :  { %4951 = vsyncadd [#allocation6], 4294967280 }
  0x3c   :  { %4952 = dma.done.wait [#allocation8], 32  }
  0x3d   :  { %4953 = vsyncadd [#allocation8], 4294967264 }
  0x3e   :  { %123 = sfence }
  0x3f   :  { %s6084_s6 = sld [smem:[#allocation19_spill]]  ;;  %vm133_vm0 = vcmask 64512   ;;  %v4971_v2 = vmov 0.0   ;;  %vm4972_vm1 = vmmov 0   ;;  %vm217_vm2 = vcmask 130048   ;;  %v5180_v15 = vld [vmem:[%s6049_s13] sm:$0xff] }
  0x40   :  { %s6085_s11 = sld [smem:[#allocation18_spill]]  ;;  %4291 = vmatprep.subr.mxu0 %v4971_v2  ;;  %4293 = vmatprep.mubr.msk.f32.mxu0 %vm4972_vm1, %v4971_v2  ;;  %v314_v10 = vld [vmem:[%s6061_s25] sm:$0xf]   ;;  %vm315_vm3 = vcmask 166912   ;;  %v5185_v16 = vld [vmem:[%s6049_s13 + $0x8] sm:$0xff]  ;;  %v5190_v17 = vld [vmem:[%s6049_s13 + $0x10] sm:$0xff] }
  0x41   :  { %4296 = vmatprep.subr.mxu1 %v4971_v2  ;;  %4300 = vmatprep.mubr.msk.f32.mxu1 %vm4972_vm1, %v4971_v2  ;;  %s6086_s7 = sld [smem:[#allocation22_spill]]  ;;  %316 = vst.msk [vmem:[#allocation2] sm:$0xf] %vm315_vm3, %v314_v10  ;;  %v5195_v18 = vld [vmem:[%s6049_s13 + $0x18] sm:$0xff]  ;;  %v5200_v19 = vld [vmem:[%s6050_s14] ss:$0 sm:$0xff]  ;;  %v6092_v38 = vmov %v314_v10 }
  0x42   :  { %s6087_s5 = sld [smem:[#allocation20_spill]]  ;;  %v5205_v20 = vld [vmem:[%s6051_s15] ss:$0 sm:$0xff]  ;;  %v5215_v22 = vld [vmem:[%s6052_s16 + $0x8] sm:$0xff]  ;;  %v5220_v23 = vld [vmem:[%s6052_s16 + $0x10] sm:$0x1f] }
  0x43   :  { %s6088_s10 = sld [smem:[#allocation21_spill]]  ;;  %v5210_v21 = vld [vmem:[%s6052_s16] sm:$0xff]  ;;  %v5230_v25 = vld [vmem:[%s6053_s17 + $0x8] sm:$0xff]  ;;  %v5235_v26 = vld [vmem:[%s6053_s17 + $0x10] sm:$0x1f] }
  0x44   :  { %s6089_s12 = sld [smem:[#allocation23_spill]]  ;;  %v5225_v24 = vld [vmem:[%s6053_s17] sm:$0xff]  ;;  %v5245_v28 = vld [vmem:[%s6054_s18 + $0x8] sm:$0xff]  ;;  %v5250_v29 = vld [vmem:[%s6054_s18 + $0x10] sm:$0xff] }
  0x45   :  { %v125_v0 = vld [vmem:[%s6084_s6] sm:$0xff]  ;;  %v5255_v30 = vld [vmem:[%s6054_s18 + $0x18] sm:$0xff]  ;;  %v5265_v32 = vld [vmem:[%s6054_s18 + $0x28] sm:$0xff]  ;;  %s6090_s4 = sld [smem:[#allocation24_spill]] }
  0x46   :  { %v124_v1 = vld [vmem:[%s6085_s11] sm:$0xf]  ;;  %4292 = vmatpush3.msra.mxu0 %v125_v0  ;;  %v5270_v33 = vld [vmem:[%s6054_s18 + $0x30] sm:$0x3f] }
  0x47   :  { %4294 = vmatmul.mubr.msk.f32.vlgmr.msra.gmra.mxu0 %vm133_vm0, %v124_v1  ;;  %v209_v3 = vld [vmem:[%s6086_s7 + $0x8] sm:$0xff]  ;;  %v208_v4 = vld [vmem:[%s6086_s7] sm:$0xff] }
  0x48   :  { %4297 = vmatpush3.msra.mxu1 %v209_v3  ;;  %v3955_v5 = vld [vmem:[%s6087_s5] ss:$0 sm:$0xff]  ;;  %s6091_s5 = sld [smem:[#allocation14_spill]] }
  0x49   :  { %4298 = vmatprep.subr.mxu1 %v4971_v2  ;;  %v5159_v11 = vld [vmem:[%s6088_s10] sm:$0xff]  ;;  %v5164_v12 = vld [vmem:[%s6088_s10 + $0x8] sm:$0xff]  ;;  %v5169_v13 = vld [vmem:[%s6088_s10 + $0x10] sm:$0x1f] }
  0x4a   :  { %4299 = vmatpush3.msra.mxu1 %v208_v4  ;;  %v5175_v14 = vld [vmem:[%s6089_s12] sm:$0x1] }
  0x4b   :  { %v5240_v27 = vld [vmem:[%s6054_s18] sm:$0xff] }
  0x4c   :  { %v5260_v31 = vld [vmem:[%s6054_s18 + $0x20] sm:$0xff] }
  0x4d   :  { %v3957_v34 = vld [vmem:[%s6090_s4] ss:$0 sm:$0xff] }
  0x4e   :  { %p3959_p1 = scmp.le.s32.totalorder %s6091_s5, 1 }
  0x4f   :  { %s5284_s9 = smov (!%p3959_p1), 1  }
 0x107   :  { %v203_v6 = vpop.f32.mrf.mxu0 }
 0x108   :  { %v204_v7 = vadd.f32 %v3955_v5, %v203_v6 }
 0x109   :  { %v4295_v8 = vpop.f32.mrf.mxu0 }
 0x10a   :  { %4825 = vtanh.f32 %v204_v7 }
 0x117   :  { %v4826_v9 = vpop.eup %4825 }
 0x118   :  { %4301 = vmatmul.mubr.msk.f32.vlgmr.msra.gmra.mxu1 %vm217_vm2, %v4826_v9 }
 0x1d6   :  { %3950 = sbr.rel (%p3959_p1) target bundleno = 7179 (0x1c0b), region = 162 }
 0x1d8   :  { %v287_v35 = vpop.f32.mrf.mxu1 }
 0x1d9   :  { %v5275_v36 = vadd.f32 %v3957_v34, %v287_v35 }
 0x1da   :  { %v4302_v37 = vpop.f32.mrf.mxu1 }
 0x1db LB: > { %vm345_vm4 = vcmask 1044480   ;;  %v4973_v39 = vmov 0.0   ;;  %vm4974_vm5 = vmmov 0   ;;  %vm341_vm6 = vcmask 171008   ;;  %s3960_s18 = sadd.s32 4294967295, %s4962_s9  ;;  %s327_s3 = sld [smem:[#allocation4 + %s4962_s9]]  ;;  %s4962_s9 = sphi %s5284_s9, %s321_s9   ;;  %v4958_v10 = vphi %v314_v10, %v6094_v10  }
 0x1dc   : > { %4303 = vmatprep.subr.mxu1 %v4973_v39  ;;  %4309 = vmatprep.mubr.msk.f32.mxu1 %vm4974_vm5, %v4973_v39  ;;  %s5329_s30 = sld [smem:[#allocation4 + %s3960_s18]]  ;;  %v333_v40 = vlaneseq  ;;  %vm426_vm7 = vcmask 261120   ;;  %vm669_vm8 = vcmask 1045504   ;;  %vm665_vm10 = vcmask 441344   ;;  %s4035_s10 = sshll.u32 %s4962_s9, 2 }
 0x1dd   : > { %4304 = vmatpush3.msk.msra.mxu1 %vm345_vm4, %v5169_v13  ;;  %4323 = vmatprep.subr.mxu0 %v4973_v39  ;;  %s3384_s0 = scalar_lea.vmem [#allocation2], %s4035_s10  ;;  %s321_s9 = sadd.s32 1, %s4962_s9  }
 0x1de   : > { %4305 = vmatprep.subr.mxu1 %v4973_v39  ;;  %4324 = vmatpush3.msk.msra.mxu0 %vm345_vm4, %v5220_v23  ;;  %v5331_v41 = vshrl.u32 %v333_v40, 7  ;;  %s6093_s17 = sld [smem:[#allocation14_spill]] }
 0x1df   : > { %4306 = vmatpush3.msra.mxu1 %v5164_v12  ;;  %4325 = vmatprep.subr.mxu0 %v4973_v39 }
 0x1e0   : > { %4307 = vmatprep.subr.mxu1 %v4973_v39  ;;  %4326 = vmatpush3.msra.mxu0 %v5215_v22  ;;  %v335_v44 = vsub.s32 0, %v5331_v41 }
 0x1e1   : > { %4308 = vmatpush3.msra.mxu1 %v5159_v11  ;;  %4327 = vmatprep.subr.mxu0 %v4973_v39 }
 0x1e2   : > { %4310 = vmatmul.mubr.msk.f32.vlgmr.msra.gmra.mxu1 %vm341_vm6, %v4958_v10  ;;  %4312 = vmatprep.subr.mxu1 %v4973_v39  ;;  %v330_v42 = vstv %s5329_s30  ;;  %s328_s16 = ssub.f32 %s327_s3, %s5329_s30 }
 0x1e3   : > { %4313 = vmatpush3.msra.mxu1 %v5195_v18  ;;  %4320 = vmatprep.mubr.msk.f32.mxu1 %vm4974_vm5, %v4973_v39  ;;  %v331_v43 = vmul.f32 %v330_v42, %v5175_v14 }
 0x1e4   : > { %4314 = vmatprep.subr.mxu1 %v4973_v39  ;;  %4328 = vmatpush3.msra.mxu0 %v5210_v21  ;;  %s329_s6 = smul.f32 0.125, %s328_s16  ;;  %p320_p2 = scmp.ge.s32.totalorder %s321_s9, %s6093_s17 }
 0x1e5   : > { %4315 = vmatpush3.msra.mxu1 %v5190_v17  ;;  %4329 = vmatprep.mubr.msk.f32.mxu0 %vm4974_vm5, %v4973_v39  ;;  %v336_v45 = vrot.slane %v331_v43, %v335_v44 }
 0x1e6   : > { %4316 = vmatprep.subr.mxu1 %v4973_v39  ;;  %4330 = vmatmul.mubr.msk.f32.vlgmr.msra.gmra.mxu0 %vm341_vm6, %v4958_v10  ;;  %v5391_v4 = vstv %s329_s6 }
 0x1e7   : > { %4317 = vmatpush3.msra.mxu1 %v5185_v16  ;;  %4341 = vmatprep.subr.mxu0 %v4973_v39  ;;  %v5339_v46 = vadd.f32 %v336_v45, %v5275_v36 }
 0x1e8   : > { %4318 = vmatprep.subr.mxu1 %v4973_v39  ;;  %4355 = vmatprep.mubr.msk.f32.mxu0 %vm4974_vm5, %v4973_v39 }
 0x1e9   : > { %4319 = vmatpush3.msra.mxu1 %v5180_v15  ;;  %4342 = vmatpush3.msk.msra.mxu0 %vm669_vm8, %v5270_v33 }
 0x1ea   : > { %4332 = vmatprep.subr.mxu1 %v4973_v39  ;;  %4343 = vmatprep.subr.mxu0 %v4973_v39 }
 0x1eb   : > { %4344 = vmatpush3.msra.mxu0 %v5265_v32 }
 0x1ec   : > { %4345 = vmatprep.subr.mxu0 %v4973_v39 }
 0x1ed   : > { %4346 = vmatpush3.msra.mxu0 %v5260_v31 }
 0x1ee   : > { %4347 = vmatprep.subr.mxu0 %v4973_v39 }
 0x1ef   : > { %4348 = vmatpush3.msra.mxu0 %v5255_v30 }
 0x1f0   : > { %4349 = vmatprep.subr.mxu0 %v4973_v39 }
 0x1f1   : > { %4350 = vmatpush3.msra.mxu0 %v5250_v29 }
 0x1f2   : > { %4351 = vmatprep.subr.mxu0 %v4973_v39 }
 0x1f3   : > { %4352 = vmatpush3.msra.mxu0 %v5245_v28 }
 0x1f4   : > { %4353 = vmatprep.subr.mxu0 %v4973_v39 }
 0x1f5   : > { %4354 = vmatpush3.msra.mxu0 %v5240_v27 }
 0x1f6   : > { %4378 = vmatprep.subr.mxu0 %v4973_v39 }
 0x2a2   : > { %v415_v47 = vpop.f32.mrf.mxu1 }
 0x2a3   : > { %v416_v48 = vadd.f32 %v415_v47, %v5339_v46 }
 0x2a4   : > { %v4311_v49 = vpop.f32.mrf.mxu1 }
 0x2a5   : > { %4827 = vtanh.f32 %v416_v48 }
 0x2a6   : > { %v584_v51 = vpop.f32.mrf.mxu0 }
 0x2a8   : > { %v4331_v52 = vpop.f32.mrf.mxu0 }
 0x2b2   : > { %v4828_v50 = vpop.eup %4827 }
 0x2b3   : > { %4321 = vmatmul.mubr.msk.f32.vlgmr.msra.gmra.mxu1 %vm426_vm7, %v4828_v50 }
 0x2b4   : > { %4333 = vmatpush3.msk.msra.mxu1 %vm345_vm4, %v5235_v26  ;;  %4338 = vmatprep.mubr.msk.f32.mxu1 %vm4974_vm5, %v4973_v39 }
 0x2b5   : > { %4334 = vmatprep.subr.mxu1 %v4973_v39 }
 0x2b6   : > { %4335 = vmatpush3.msra.mxu1 %v5230_v25 }
 0x2b7   : > { %4336 = vmatprep.subr.mxu1 %v4973_v39 }
 0x2b8   : > { %4337 = vmatpush3.msra.mxu1 %v5225_v24 }
 0x2b9   : > { %4358 = vmatprep.subr.mxu1 %v4973_v39 }
 0x373   : > { %v496_v53 = vpop.f32.mrf.mxu1 }
 0x374   : > { %v497_v54 = vadd.f32 %v5200_v19, %v496_v53 }
 0x375   : > { %v4322_v55 = vpop.f32.mrf.mxu1 }
 0x376   : > { %v501_v56 = vmin.f32 %v497_v54, 20.0  ;;  %vm500_vm9 = vcmp.gt.f32.partialorder %v497_v54, 20.0 }
 0x378   : > { %v502_v57 = vmul.f32 1.442695, %v501_v56 }
 0x37a   : > { %4829 = vpow2.f32 %v502_v57 }
 0x387   : > { %v4830_v58 = vpop.eup %4829 }
 0x388   : > { %v504_v59 = vadd.f32 1.0, %v4830_v58 }
 0x38a   : > { %4831 = vlog2.f32 %v504_v59 }
 0x397   : > { %v4832_v60 = vpop.eup %4831 }
 0x398   : > { %v506_v61 = vmul.f32 0.6931472, %v4832_v60 }
 0x39a   : > { %v507_v62 = vsel %vm500_vm9, %v497_v54, %v506_v61 }
 0x39b   : > { %v514_v63 = vmul.f32 %v5205_v20, %v507_v62 }
 0x39d   : > { %4339 = vmatmul.mubr.msk.f32.vlgmr.msra.gmra.mxu1 %vm341_vm6, %v514_v63 }
 0x39e   : > { %4359 = vmatpush3.msk.msra.mxu1 %vm345_vm4, %v5169_v13  ;;  %4364 = vmatprep.mubr.msk.f32.mxu1 %vm4974_vm5, %v4973_v39 }
 0x39f   : > { %4360 = vmatprep.subr.mxu1 %v4973_v39 }
 0x3a0   : > { %4361 = vmatpush3.msra.mxu1 %v5164_v12 }
 0x3a1   : > { %4362 = vmatprep.subr.mxu1 %v4973_v39 }
 0x3a2   : > { %4363 = vmatpush3.msra.mxu1 %v5159_v11 }
 0x3a3   : > { %4367 = vmatprep.subr.mxu1 %v4973_v39 }
 0x45d   : > { %v660_v0 = vpop.f32.mrf.mxu1 }
 0x45e   : > { %v664_v1 = vmul.f32 %v660_v0, %v584_v51 }
 0x45f   : > { %v4340_v3 = vpop.f32.mrf.mxu1 }
 0x460   : > { %4356 = vmatmul.mubr.msk.f32.vlgmr.msra.gmra.mxu0 %vm665_vm10, %v664_v1 }
 0x461   : > { %4379 = vmatpush3.msk.msra.mxu0 %vm345_vm4, %v5220_v23  ;;  %4384 = vmatprep.mubr.msk.f32.mxu0 %vm4974_vm5, %v4973_v39 }
 0x462   : > { %4380 = vmatprep.subr.mxu0 %v4973_v39 }
 0x463   : > { %4381 = vmatpush3.msra.mxu0 %v5215_v22 }
 0x464   : > { %4382 = vmatprep.subr.mxu0 %v4973_v39 }
 0x465   : > { %4383 = vmatpush3.msra.mxu0 %v5210_v21 }
 0x466   : > { %4396 = vmatprep.subr.mxu0 %v4973_v39 }
 0x520   : > { %v739_v5 = vpop.f32.mrf.mxu0 }
 0x521   : > { %v740_v6 = vadd.f32 %v739_v5, %v514_v63 }
 0x522   : > { %v4357_v7 = vpop.f32.mrf.mxu0 }
 0x523   : > { %v743_v8 = vmul.f32 %v740_v6, %v5391_v4 }
 0x525   : > { %v5395_v9 = vadd.f32 %v4958_v10, %v743_v8  ;;  %v340_v10 = vmul.f32 %v5391_v4, %v5175_v14 }
 0x527   : > { %4365 = vmatmul.mubr.msk.f32.vlgmr.msra.gmra.mxu1 %vm341_vm6, %v5395_v9  ;;  %4385 = vmatmul.mubr.msk.f32.vlgmr.msra.gmra.mxu0 %vm341_vm6, %v5395_v9  ;;  %v5432_v34 = vrot.slane %v340_v10, %v335_v44 }
 0x528   : > { %4368 = vmatpush3.msra.mxu1 %v5195_v18  ;;  %4375 = vmatprep.mubr.msk.f32.mxu1 %vm4974_vm5, %v4973_v39 }
 0x529   : > { %4369 = vmatprep.subr.mxu1 %v4973_v39  ;;  %4397 = vmatpush3.msk.msra.mxu0 %vm669_vm8, %v5270_v33  ;;  %v5436_v35 = vadd.f32 %v5432_v34, %v5339_v46 }
 0x52a   : > { %4370 = vmatpush3.msra.mxu1 %v5190_v17  ;;  %4398 = vmatprep.subr.mxu0 %v4973_v39 }
 0x52b   : > { %4371 = vmatprep.subr.mxu1 %v4973_v39  ;;  %4399 = vmatpush3.msra.mxu0 %v5265_v32  ;;  %v5508_v63 = vadd.f32 %v5436_v35, %v5432_v34 }
 0x52c   : > { %4372 = vmatpush3.msra.mxu1 %v5185_v16  ;;  %4400 = vmatprep.subr.mxu0 %v4973_v39 }
 0x52d   : > { %4373 = vmatprep.subr.mxu1 %v4973_v39  ;;  %4401 = vmatpush3.msra.mxu0 %v5260_v31 }
 0x52e   : > { %4374 = vmatpush3.msra.mxu1 %v5180_v15  ;;  %4402 = vmatprep.subr.mxu0 %v4973_v39 }
 0x52f   : > { %4387 = vmatprep.subr.mxu1 %v4973_v39  ;;  %4403 = vmatpush3.msra.mxu0 %v5255_v30 }
 0x530   : > { %4404 = vmatprep.subr.mxu0 %v4973_v39  ;;  %4410 = vmatprep.mubr.msk.f32.mxu0 %vm4974_vm5, %v4973_v39 }
 0x531   : > { %4405 = vmatpush3.msra.mxu0 %v5250_v29 }
 0x532   : > { %4406 = vmatprep.subr.mxu0 %v4973_v39 }
 0x533   : > { %4407 = vmatpush3.msra.mxu0 %v5245_v28 }
 0x534   : > { %4408 = vmatprep.subr.mxu0 %v4973_v39 }
 0x535   : > { %4409 = vmatpush3.msra.mxu0 %v5240_v27 }
 0x536   : > { %4433 = vmatprep.subr.mxu0 %v4973_v39 }
 0x5e7   : > { %v821_v37 = vpop.f32.mrf.mxu1  ;;  %v974_v38 = vpop.f32.mrf.mxu0 }
 0x5e8   : > { %v822_v40 = vadd.f32 %v821_v37, %v5436_v35 }
 0x5e9   : > { %v4366_v42 = vpop.f32.mrf.mxu1  ;;  %v4386_v43 = vpop.f32.mrf.mxu0 }
 0x5ea   : > { %4833 = vtanh.f32 %v822_v40 }
 0x5f7   : > { %v4834_v45 = vpop.eup %4833 }
 0x5f8   : > { %4376 = vmatmul.mubr.msk.f32.vlgmr.msra.gmra.mxu1 %vm426_vm7, %v4834_v45 }
 0x5f9   : > { %4388 = vmatpush3.msk.msra.mxu1 %vm345_vm4, %v5235_v26  ;;  %4393 = vmatprep.mubr.msk.f32.mxu1 %vm4974_vm5, %v4973_v39 }
 0x5fa   : > { %4389 = vmatprep.subr.mxu1 %v4973_v39 }
 0x5fb   : > { %4390 = vmatpush3.msra.mxu1 %v5230_v25 }
 0x5fc   : > { %4391 = vmatprep.subr.mxu1 %v4973_v39 }
 0x5fd   : > { %4392 = vmatpush3.msra.mxu1 %v5225_v24 }
 0x5fe   : > { %4413 = vmatprep.subr.mxu1 %v4973_v39 }
 0x6b8   : > { %v895_v41 = vpop.f32.mrf.mxu1 }
 0x6b9   : > { %v896_v44 = vadd.f32 %v5200_v19, %v895_v41 }
 0x6ba   : > { %v4377_v46 = vpop.f32.mrf.mxu1 }
 0x6bb   : > { %v900_v47 = vmin.f32 %v896_v44, 20.0  ;;  %vm899_vm11 = vcmp.gt.f32.partialorder %v896_v44, 20.0 }
 0x6bd   : > { %v901_v48 = vmul.f32 1.442695, %v900_v47 }
 0x6bf   : > { %4835 = vpow2.f32 %v901_v48 }
 0x6cc   : > { %v4836_v49 = vpop.eup %4835 }
 0x6cd   : > { %v903_v50 = vadd.f32 1.0, %v4836_v49 }
 0x6cf   : > { %4837 = vlog2.f32 %v903_v50 }
 0x6dc   : > { %v4838_v51 = vpop.eup %4837 }
 0x6dd   : > { %v905_v52 = vmul.f32 0.6931472, %v4838_v51 }
 0x6df   : > { %v906_v53 = vsel %vm899_vm11, %v896_v44, %v905_v52 }
 0x6e0   : > { %v907_v54 = vmul.f32 %v5205_v20, %v906_v53  ;;  %v5580_v53 = vadd.f32 %v5508_v63, %v5432_v34 }
 0x6e2   : > { %4394 = vmatmul.mubr.msk.f32.vlgmr.msra.gmra.mxu1 %vm341_vm6, %v907_v54 }
 0x6e3   : > { %4414 = vmatpush3.msk.msra.mxu1 %vm345_vm4, %v5169_v13  ;;  %4419 = vmatprep.mubr.msk.f32.mxu1 %vm4974_vm5, %v4973_v39 }
 0x6e4   : > { %4415 = vmatprep.subr.mxu1 %v4973_v39 }
 0x6e5   : > { %4416 = vmatpush3.msra.mxu1 %v5164_v12 }
 0x6e6   : > { %4417 = vmatprep.subr.mxu1 %v4973_v39 }
 0x6e7   : > { %4418 = vmatpush3.msra.mxu1 %v5159_v11 }
 0x6e8   : > { %4422 = vmatprep.subr.mxu1 %v4973_v39 }
 0x7a2   : > { %v1047_v55 = vpop.f32.mrf.mxu1 }
 0x7a3   : > { %v1051_v56 = vmul.f32 %v1047_v55, %v974_v38 }
 0x7a4   : > { %v4395_v57 = vpop.f32.mrf.mxu1 }
 0x7a5   : > { %4411 = vmatmul.mubr.msk.f32.vlgmr.msra.gmra.mxu0 %vm665_vm10, %v1051_v56 }
 0x7a6   : > { %4434 = vmatpush3.msk.msra.mxu0 %vm345_vm4, %v5220_v23  ;;  %4439 = vmatprep.mubr.msk.f32.mxu0 %vm4974_vm5, %v4973_v39 }
 0x7a7   : > { %4435 = vmatprep.subr.mxu0 %v4973_v39 }
 0x7a8   : > { %4436 = vmatpush3.msra.mxu0 %v5215_v22 }
 0x7a9   : > { %4437 = vmatprep.subr.mxu0 %v4973_v39 }
 0x7aa   : > { %4438 = vmatpush3.msra.mxu0 %v5210_v21 }
 0x7ab   : > { %4451 = vmatprep.subr.mxu0 %v4973_v39 }
 0x865   : > { %v1121_v58 = vpop.f32.mrf.mxu0 }
 0x866   : > { %v1122_v59 = vadd.f32 %v1121_v58, %v907_v54 }
 0x867   : > { %v4412_v60 = vpop.f32.mrf.mxu0 }
 0x868   : > { %v1125_v61 = vmul.f32 %v1122_v59, %v5391_v4 }
 0x86a   : > { %v5473_v62 = vadd.f32 %v1125_v61, %v5395_v9 }
 0x86c   : > { %4420 = vmatmul.mubr.msk.f32.vlgmr.msra.gmra.mxu1 %vm341_vm6, %v5473_v62  ;;  %4440 = vmatmul.mubr.msk.f32.vlgmr.msra.gmra.mxu0 %vm341_vm6, %v5473_v62 }
 0x86d   : > { %4423 = vmatpush3.msra.mxu1 %v5195_v18  ;;  %4430 = vmatprep.mubr.msk.f32.mxu1 %vm4974_vm5, %v4973_v39 }
 0x86e   : > { %4424 = vmatprep.subr.mxu1 %v4973_v39  ;;  %4452 = vmatpush3.msk.msra.mxu0 %vm669_vm8, %v5270_v33 }
 0x86f   : > { %4425 = vmatpush3.msra.mxu1 %v5190_v17  ;;  %4453 = vmatprep.subr.mxu0 %v4973_v39 }
 0x870   : > { %4426 = vmatprep.subr.mxu1 %v4973_v39  ;;  %4454 = vmatpush3.msra.mxu0 %v5265_v32 }
 0x871   : > { %4427 = vmatpush3.msra.mxu1 %v5185_v16  ;;  %4455 = vmatprep.subr.mxu0 %v4973_v39 }
 0x872   : > { %4428 = vmatprep.subr.mxu1 %v4973_v39  ;;  %4456 = vmatpush3.msra.mxu0 %v5260_v31 }
 0x873   : > { %4429 = vmatpush3.msra.mxu1 %v5180_v15  ;;  %4457 = vmatprep.subr.mxu0 %v4973_v39 }
 0x874   : > { %4442 = vmatprep.subr.mxu1 %v4973_v39  ;;  %4458 = vmatpush3.msra.mxu0 %v5255_v30 }
 0x875   : > { %4459 = vmatprep.subr.mxu0 %v4973_v39  ;;  %4465 = vmatprep.mubr.msk.f32.mxu0 %vm4974_vm5, %v4973_v39 }
 0x876   : > { %4460 = vmatpush3.msra.mxu0 %v5250_v29 }
 0x877   : > { %4461 = vmatprep.subr.mxu0 %v4973_v39 }
 0x878   : > { %4462 = vmatpush3.msra.mxu0 %v5245_v28 }
 0x879   : > { %4463 = vmatprep.subr.mxu0 %v4973_v39 }
 0x87a   : > { %4464 = vmatpush3.msra.mxu0 %v5240_v27 }
 0x87b   : > { %4488 = vmatprep.subr.mxu0 %v4973_v39 }
 0x92c   : > { %v1197_v0 = vpop.f32.mrf.mxu1  ;;  %v1350_v1 = vpop.f32.mrf.mxu0 }
 0x92d   : > { %v1198_v3 = vadd.f32 %v1197_v0, %v5508_v63 }
 0x92e   : > { %v4421_v5 = vpop.f32.mrf.mxu1  ;;  %v4441_v6 = vpop.f32.mrf.mxu0 }
 0x92f   : > { %4839 = vtanh.f32 %v1198_v3 }
 0x93c   : > { %v4840_v7 = vpop.eup %4839 }
 0x93d   : > { %4431 = vmatmul.mubr.msk.f32.vlgmr.msra.gmra.mxu1 %vm426_vm7, %v4840_v7 }
 0x93e   : > { %4443 = vmatpush3.msk.msra.mxu1 %vm345_vm4, %v5235_v26  ;;  %4448 = vmatprep.mubr.msk.f32.mxu1 %vm4974_vm5, %v4973_v39 }
 0x93f   : > { %4444 = vmatprep.subr.mxu1 %v4973_v39 }
 0x940   : > { %4445 = vmatpush3.msra.mxu1 %v5230_v25 }
 0x941   : > { %4446 = vmatprep.subr.mxu1 %v4973_v39 }
 0x942   : > { %4447 = vmatpush3.msra.mxu1 %v5225_v24 }
 0x943   : > { %4468 = vmatprep.subr.mxu1 %v4973_v39 }
 0x9fd   : > { %v1271_v8 = vpop.f32.mrf.mxu1 }
 0x9fe   : > { %v1272_v9 = vadd.f32 %v5200_v19, %v1271_v8 }
 0x9ff   : > { %v4432_v10 = vpop.f32.mrf.mxu1 }
 0xa00   : > { %v1276_v35 = vmin.f32 %v1272_v9, 20.0  ;;  %vm1275_vm12 = vcmp.gt.f32.partialorder %v1272_v9, 20.0 }
 0xa02   : > { %v1277_v37 = vmul.f32 1.442695, %v1276_v35 }
 0xa04   : > { %4841 = vpow2.f32 %v1277_v37 }
 0xa11   : > { %v4842_v38 = vpop.eup %4841 }
 0xa12   : > { %v1279_v40 = vadd.f32 1.0, %v4842_v38 }
 0xa14   : > { %4843 = vlog2.f32 %v1279_v40 }
 0xa21   : > { %v4844_v42 = vpop.eup %4843 }
 0xa22   : > { %v1281_v43 = vmul.f32 0.6931472, %v4844_v42 }
 0xa24   : > { %v1282_v45 = vsel %vm1275_vm12, %v1272_v9, %v1281_v43 }
 0xa25   : > { %v1283_v41 = vmul.f32 %v5205_v20, %v1282_v45  ;;  %v5652_v45 = vadd.f32 %v5580_v53, %v5432_v34 }
 0xa27   : > { %4449 = vmatmul.mubr.msk.f32.vlgmr.msra.gmra.mxu1 %vm341_vm6, %v1283_v41 }
 0xa28   : > { %4469 = vmatpush3.msk.msra.mxu1 %vm345_vm4, %v5169_v13  ;;  %4474 = vmatprep.mubr.msk.f32.mxu1 %vm4974_vm5, %v4973_v39 }
 0xa29   : > { %4470 = vmatprep.subr.mxu1 %v4973_v39 }
 0xa2a   : > { %4471 = vmatpush3.msra.mxu1 %v5164_v12 }
 0xa2b   : > { %4472 = vmatprep.subr.mxu1 %v4973_v39 }
 0xa2c   : > { %4473 = vmatpush3.msra.mxu1 %v5159_v11 }
 0xa2d   : > { %4477 = vmatprep.subr.mxu1 %v4973_v39 }
 0xae7   : > { %v1423_v44 = vpop.f32.mrf.mxu1 }
 0xae8   : > { %v1427_v46 = vmul.f32 %v1423_v44, %v1350_v1 }
 0xae9   : > { %v4450_v47 = vpop.f32.mrf.mxu1 }
 0xaea   : > { %4466 = vmatmul.mubr.msk.f32.vlgmr.msra.gmra.mxu0 %vm665_vm10, %v1427_v46 }
 0xaeb   : > { %4489 = vmatpush3.msk.msra.mxu0 %vm345_vm4, %v5220_v23  ;;  %4494 = vmatprep.mubr.msk.f32.mxu0 %vm4974_vm5, %v4973_v39 }
 0xaec   : > { %4490 = vmatprep.subr.mxu0 %v4973_v39 }
 0xaed   : > { %4491 = vmatpush3.msra.mxu0 %v5215_v22 }
 0xaee   : > { %4492 = vmatprep.subr.mxu0 %v4973_v39 }
 0xaef   : > { %4493 = vmatpush3.msra.mxu0 %v5210_v21 }
 0xaf0   : > { %4506 = vmatprep.subr.mxu0 %v4973_v39 }
 0xbaa   : > { %v1497_v48 = vpop.f32.mrf.mxu0 }
 0xbab   : > { %v1498_v49 = vadd.f32 %v1497_v48, %v1283_v41 }
 0xbac   : > { %v4467_v50 = vpop.f32.mrf.mxu0 }
 0xbad   : > { %v1501_v51 = vmul.f32 %v1498_v49, %v5391_v4 }
 0xbaf   : > { %v5545_v52 = vadd.f32 %v1501_v51, %v5473_v62 }
 0xbb1   : > { %4475 = vmatmul.mubr.msk.f32.vlgmr.msra.gmra.mxu1 %vm341_vm6, %v5545_v52  ;;  %4495 = vmatmul.mubr.msk.f32.vlgmr.msra.gmra.mxu0 %vm341_vm6, %v5545_v52 }
 0xbb2   : > { %4478 = vmatpush3.msra.mxu1 %v5195_v18  ;;  %4485 = vmatprep.mubr.msk.f32.mxu1 %vm4974_vm5, %v4973_v39 }
 0xbb3   : > { %4479 = vmatprep.subr.mxu1 %v4973_v39  ;;  %4507 = vmatpush3.msk.msra.mxu0 %vm669_vm8, %v5270_v33 }
 0xbb4   : > { %4480 = vmatpush3.msra.mxu1 %v5190_v17  ;;  %4508 = vmatprep.subr.mxu0 %v4973_v39 }
 0xbb5   : > { %4481 = vmatprep.subr.mxu1 %v4973_v39  ;;  %4509 = vmatpush3.msra.mxu0 %v5265_v32 }
 0xbb6   : > { %4482 = vmatpush3.msra.mxu1 %v5185_v16  ;;  %4510 = vmatprep.subr.mxu0 %v4973_v39 }
 0xbb7   : > { %4483 = vmatprep.subr.mxu1 %v4973_v39  ;;  %4511 = vmatpush3.msra.mxu0 %v5260_v31 }
 0xbb8   : > { %4484 = vmatpush3.msra.mxu1 %v5180_v15  ;;  %4512 = vmatprep.subr.mxu0 %v4973_v39 }
 0xbb9   : > { %4497 = vmatprep.subr.mxu1 %v4973_v39  ;;  %4513 = vmatpush3.msra.mxu0 %v5255_v30 }
 0xbba   : > { %4514 = vmatprep.subr.mxu0 %v4973_v39  ;;  %4520 = vmatprep.mubr.msk.f32.mxu0 %vm4974_vm5, %v4973_v39 }
 0xbbb   : > { %4515 = vmatpush3.msra.mxu0 %v5250_v29 }
 0xbbc   : > { %4516 = vmatprep.subr.mxu0 %v4973_v39 }
 0xbbd   : > { %4517 = vmatpush3.msra.mxu0 %v5245_v28 }
 0xbbe   : > { %4518 = vmatprep.subr.mxu0 %v4973_v39 }
 0xbbf   : > { %4519 = vmatpush3.msra.mxu0 %v5240_v27 }
 0xbc0   : > { %4543 = vmatprep.subr.mxu0 %v4973_v39 }
 0xc71   : > { %v1573_v54 = vpop.f32.mrf.mxu1  ;;  %v1726_v55 = vpop.f32.mrf.mxu0 }
 0xc72   : > { %v1574_v56 = vadd.f32 %v1573_v54, %v5580_v53 }
 0xc73   : > { %v4476_v57 = vpop.f32.mrf.mxu1  ;;  %v4496_v58 = vpop.f32.mrf.mxu0 }
 0xc74   : > { %4845 = vtanh.f32 %v1574_v56 }
 0xc81   : > { %v4846_v59 = vpop.eup %4845 }
 0xc82   : > { %4486 = vmatmul.mubr.msk.f32.vlgmr.msra.gmra.mxu1 %vm426_vm7, %v4846_v59 }
 0xc83   : > { %4498 = vmatpush3.msk.msra.mxu1 %vm345_vm4, %v5235_v26  ;;  %4503 = vmatprep.mubr.msk.f32.mxu1 %vm4974_vm5, %v4973_v39 }
 0xc84   : > { %4499 = vmatprep.subr.mxu1 %v4973_v39 }
 0xc85   : > { %4500 = vmatpush3.msra.mxu1 %v5230_v25 }
 0xc86   : > { %4501 = vmatprep.subr.mxu1 %v4973_v39 }
 0xc87   : > { %4502 = vmatpush3.msra.mxu1 %v5225_v24 }
 0xc88   : > { %4523 = vmatprep.subr.mxu1 %v4973_v39 }
 0xd42   : > { %v1647_v60 = vpop.f32.mrf.mxu1 }
 0xd43   : > { %v1648_v61 = vadd.f32 %v5200_v19, %v1647_v60 }
 0xd44   : > { %v4487_v62 = vpop.f32.mrf.mxu1 }
 0xd45   : > { %v1652_v63 = vmin.f32 %v1648_v61, 20.0  ;;  %vm1651_vm13 = vcmp.gt.f32.partialorder %v1648_v61, 20.0 }
 0xd47   : > { %v1653_v0 = vmul.f32 1.442695, %v1652_v63 }
 0xd49   : > { %4847 = vpow2.f32 %v1653_v0 }
 0xd56   : > { %v4848_v1 = vpop.eup %4847 }
 0xd57   : > { %v1655_v3 = vadd.f32 1.0, %v4848_v1 }
 0xd59   : > { %4849 = vlog2.f32 %v1655_v3 }
 0xd66   : > { %v4850_v5 = vpop.eup %4849 }
 0xd67   : > { %v1657_v6 = vmul.f32 0.6931472, %v4850_v5 }
 0xd69   : > { %v1658_v7 = vsel %vm1651_vm13, %v1648_v61, %v1657_v6 }
 0xd6a   : > { %v1659_v8 = vmul.f32 %v5205_v20, %v1658_v7  ;;  %v5724_v7 = vadd.f32 %v5652_v45, %v5432_v34 }
 0xd6c   : > { %4504 = vmatmul.mubr.msk.f32.vlgmr.msra.gmra.mxu1 %vm341_vm6, %v1659_v8 }
 0xd6d   : > { %4524 = vmatpush3.msk.msra.mxu1 %vm345_vm4, %v5169_v13  ;;  %4529 = vmatprep.mubr.msk.f32.mxu1 %vm4974_vm5, %v4973_v39 }
 0xd6e   : > { %4525 = vmatprep.subr.mxu1 %v4973_v39 }
 0xd6f   : > { %4526 = vmatpush3.msra.mxu1 %v5164_v12 }
 0xd70   : > { %4527 = vmatprep.subr.mxu1 %v4973_v39 }
 0xd71   : > { %4528 = vmatpush3.msra.mxu1 %v5159_v11 }
 0xd72   : > { %4532 = vmatprep.subr.mxu1 %v4973_v39 }
 0xe2c   : > { %v1799_v9 = vpop.f32.mrf.mxu1 }
 0xe2d   : > { %v1803_v10 = vmul.f32 %v1799_v9, %v1726_v55 }
 0xe2e   : > { %v4505_v35 = vpop.f32.mrf.mxu1 }
 0xe2f   : > { %4521 = vmatmul.mubr.msk.f32.vlgmr.msra.gmra.mxu0 %vm665_vm10, %v1803_v10 }
 0xe30   : > { %4544 = vmatpush3.msk.msra.mxu0 %vm345_vm4, %v5220_v23  ;;  %4549 = vmatprep.mubr.msk.f32.mxu0 %vm4974_vm5, %v4973_v39 }
 0xe31   : > { %4545 = vmatprep.subr.mxu0 %v4973_v39 }
 0xe32   : > { %4546 = vmatpush3.msra.mxu0 %v5215_v22 }
 0xe33   : > { %4547 = vmatprep.subr.mxu0 %v4973_v39 }
 0xe34   : > { %4548 = vmatpush3.msra.mxu0 %v5210_v21 }
 0xe35   : > { %4561 = vmatprep.subr.mxu0 %v4973_v39 }
 0xeef   : > { %v1873_v37 = vpop.f32.mrf.mxu0 }
 0xef0   : > { %v1874_v38 = vadd.f32 %v1873_v37, %v1659_v8 }
 0xef1   : > { %v4522_v40 = vpop.f32.mrf.mxu0 }
 0xef2   : > { %v1877_v42 = vmul.f32 %v1874_v38, %v5391_v4 }
 0xef4   : > { %v5617_v43 = vadd.f32 %v1877_v42, %v5545_v52 }
 0xef6   : > { %4530 = vmatmul.mubr.msk.f32.vlgmr.msra.gmra.mxu1 %vm341_vm6, %v5617_v43  ;;  %4550 = vmatmul.mubr.msk.f32.vlgmr.msra.gmra.mxu0 %vm341_vm6, %v5617_v43 }
 0xef7   : > { %4533 = vmatpush3.msra.mxu1 %v5195_v18  ;;  %4540 = vmatprep.mubr.msk.f32.mxu1 %vm4974_vm5, %v4973_v39 }
 0xef8   : > { %4534 = vmatprep.subr.mxu1 %v4973_v39  ;;  %4562 = vmatpush3.msk.msra.mxu0 %vm669_vm8, %v5270_v33 }
 0xef9   : > { %4535 = vmatpush3.msra.mxu1 %v5190_v17  ;;  %4563 = vmatprep.subr.mxu0 %v4973_v39 }
 0xefa   : > { %4536 = vmatprep.subr.mxu1 %v4973_v39  ;;  %4564 = vmatpush3.msra.mxu0 %v5265_v32 }
 0xefb   : > { %4537 = vmatpush3.msra.mxu1 %v5185_v16  ;;  %4565 = vmatprep.subr.mxu0 %v4973_v39 }
 0xefc   : > { %4538 = vmatprep.subr.mxu1 %v4973_v39  ;;  %4566 = vmatpush3.msra.mxu0 %v5260_v31 }
 0xefd   : > { %4539 = vmatpush3.msra.mxu1 %v5180_v15  ;;  %4567 = vmatprep.subr.mxu0 %v4973_v39 }
 0xefe   : > { %4552 = vmatprep.subr.mxu1 %v4973_v39  ;;  %4568 = vmatpush3.msra.mxu0 %v5255_v30 }
 0xeff   : > { %4569 = vmatprep.subr.mxu0 %v4973_v39  ;;  %4575 = vmatprep.mubr.msk.f32.mxu0 %vm4974_vm5, %v4973_v39 }
 0xf00   : > { %4570 = vmatpush3.msra.mxu0 %v5250_v29 }
 0xf01   : > { %4571 = vmatprep.subr.mxu0 %v4973_v39 }
 0xf02   : > { %4572 = vmatpush3.msra.mxu0 %v5245_v28 }
 0xf03   : > { %4573 = vmatprep.subr.mxu0 %v4973_v39 }
 0xf04   : > { %4574 = vmatpush3.msra.mxu0 %v5240_v27 }
 0xf05   : > { %4598 = vmatprep.subr.mxu0 %v4973_v39 }
 0xfb6   : > { %v1949_v41 = vpop.f32.mrf.mxu1  ;;  %v2102_v44 = vpop.f32.mrf.mxu0 }
 0xfb7   : > { %v1950_v46 = vadd.f32 %v1949_v41, %v5652_v45 }
 0xfb8   : > { %v4531_v47 = vpop.f32.mrf.mxu1  ;;  %v4551_v48 = vpop.f32.mrf.mxu0 }
 0xfb9   : > { %4851 = vtanh.f32 %v1950_v46 }
 0xfc6   : > { %v4852_v49 = vpop.eup %4851 }
 0xfc7   : > { %4541 = vmatmul.mubr.msk.f32.vlgmr.msra.gmra.mxu1 %vm426_vm7, %v4852_v49 }
 0xfc8   : > { %4553 = vmatpush3.msk.msra.mxu1 %vm345_vm4, %v5235_v26  ;;  %4558 = vmatprep.mubr.msk.f32.mxu1 %vm4974_vm5, %v4973_v39 }
 0xfc9   : > { %4554 = vmatprep.subr.mxu1 %v4973_v39 }
 0xfca   : > { %4555 = vmatpush3.msra.mxu1 %v5230_v25 }
 0xfcb   : > { %4556 = vmatprep.subr.mxu1 %v4973_v39 }
 0xfcc   : > { %4557 = vmatpush3.msra.mxu1 %v5225_v24 }
 0xfcd   : > { %4578 = vmatprep.subr.mxu1 %v4973_v39 }
0x1087   : > { %v2023_v50 = vpop.f32.mrf.mxu1 }
0x1088   : > { %v2024_v51 = vadd.f32 %v5200_v19, %v2023_v50 }
0x1089   : > { %v4542_v52 = vpop.f32.mrf.mxu1 }
0x108a   : > { %v2028_v53 = vmin.f32 %v2024_v51, 20.0  ;;  %vm2027_vm14 = vcmp.gt.f32.partialorder %v2024_v51, 20.0 }
0x108c   : > { %v2029_v54 = vmul.f32 1.442695, %v2028_v53 }
0x108e   : > { %4853 = vpow2.f32 %v2029_v54 }
0x109b   : > { %v4854_v55 = vpop.eup %4853 }
0x109c   : > { %v2031_v56 = vadd.f32 1.0, %v4854_v55 }
0x109e   : > { %4855 = vlog2.f32 %v2031_v56 }
0x10ab   : > { %v4856_v57 = vpop.eup %4855 }
0x10ac   : > { %v2033_v58 = vmul.f32 0.6931472, %v4856_v57 }
0x10ae   : > { %v2034_v59 = vsel %vm2027_vm14, %v2024_v51, %v2033_v58 }
0x10af   : > { %v2035_v60 = vmul.f32 %v5205_v20, %v2034_v59  ;;  %v5796_v59 = vadd.f32 %v5724_v7, %v5432_v34 }
0x10b1   : > { %4559 = vmatmul.mubr.msk.f32.vlgmr.msra.gmra.mxu1 %vm341_vm6, %v2035_v60 }
0x10b2   : > { %4579 = vmatpush3.msk.msra.mxu1 %vm345_vm4, %v5169_v13  ;;  %4584 = vmatprep.mubr.msk.f32.mxu1 %vm4974_vm5, %v4973_v39 }
0x10b3   : > { %4580 = vmatprep.subr.mxu1 %v4973_v39 }
0x10b4   : > { %4581 = vmatpush3.msra.mxu1 %v5164_v12 }
0x10b5   : > { %4582 = vmatprep.subr.mxu1 %v4973_v39 }
0x10b6   : > { %4583 = vmatpush3.msra.mxu1 %v5159_v11 }
0x10b7   : > { %4587 = vmatprep.subr.mxu1 %v4973_v39 }
0x1171   : > { %v2175_v61 = vpop.f32.mrf.mxu1 }
0x1172   : > { %v2179_v62 = vmul.f32 %v2175_v61, %v2102_v44 }
0x1173   : > { %v4560_v63 = vpop.f32.mrf.mxu1 }
0x1174   : > { %4576 = vmatmul.mubr.msk.f32.vlgmr.msra.gmra.mxu0 %vm665_vm10, %v2179_v62 }
0x1175   : > { %4599 = vmatpush3.msk.msra.mxu0 %vm345_vm4, %v5220_v23  ;;  %4604 = vmatprep.mubr.msk.f32.mxu0 %vm4974_vm5, %v4973_v39 }
0x1176   : > { %4600 = vmatprep.subr.mxu0 %v4973_v39 }
0x1177   : > { %4601 = vmatpush3.msra.mxu0 %v5215_v22 }
0x1178   : > { %4602 = vmatprep.subr.mxu0 %v4973_v39 }
0x1179   : > { %4603 = vmatpush3.msra.mxu0 %v5210_v21 }
0x117a   : > { %4616 = vmatprep.subr.mxu0 %v4973_v39 }
0x1234   : > { %v2249_v0 = vpop.f32.mrf.mxu0 }
0x1235   : > { %v2250_v1 = vadd.f32 %v2249_v0, %v2035_v60 }
0x1236   : > { %v4577_v3 = vpop.f32.mrf.mxu0 }
0x1237   : > { %v2253_v5 = vmul.f32 %v2250_v1, %v5391_v4 }
0x1239   : > { %v5689_v6 = vadd.f32 %v2253_v5, %v5617_v43 }
0x123b   : > { %4585 = vmatmul.mubr.msk.f32.vlgmr.msra.gmra.mxu1 %vm341_vm6, %v5689_v6  ;;  %4605 = vmatmul.mubr.msk.f32.vlgmr.msra.gmra.mxu0 %vm341_vm6, %v5689_v6 }
0x123c   : > { %4588 = vmatpush3.msra.mxu1 %v5195_v18  ;;  %4595 = vmatprep.mubr.msk.f32.mxu1 %vm4974_vm5, %v4973_v39 }
0x123d   : > { %4589 = vmatprep.subr.mxu1 %v4973_v39  ;;  %4617 = vmatpush3.msk.msra.mxu0 %vm669_vm8, %v5270_v33 }
0x123e   : > { %4590 = vmatpush3.msra.mxu1 %v5190_v17  ;;  %4618 = vmatprep.subr.mxu0 %v4973_v39 }
0x123f   : > { %4591 = vmatprep.subr.mxu1 %v4973_v39  ;;  %4619 = vmatpush3.msra.mxu0 %v5265_v32 }
0x1240   : > { %4592 = vmatpush3.msra.mxu1 %v5185_v16  ;;  %4620 = vmatprep.subr.mxu0 %v4973_v39 }
0x1241   : > { %4593 = vmatprep.subr.mxu1 %v4973_v39  ;;  %4621 = vmatpush3.msra.mxu0 %v5260_v31 }
0x1242   : > { %4594 = vmatpush3.msra.mxu1 %v5180_v15  ;;  %4622 = vmatprep.subr.mxu0 %v4973_v39 }
0x1243   : > { %4607 = vmatprep.subr.mxu1 %v4973_v39  ;;  %4623 = vmatpush3.msra.mxu0 %v5255_v30 }
0x1244   : > { %4624 = vmatprep.subr.mxu0 %v4973_v39  ;;  %4630 = vmatprep.mubr.msk.f32.mxu0 %vm4974_vm5, %v4973_v39 }
0x1245   : > { %4625 = vmatpush3.msra.mxu0 %v5250_v29 }
0x1246   : > { %4626 = vmatprep.subr.mxu0 %v4973_v39 }
0x1247   : > { %4627 = vmatpush3.msra.mxu0 %v5245_v28 }
0x1248   : > { %4628 = vmatprep.subr.mxu0 %v4973_v39 }
0x1249   : > { %4629 = vmatpush3.msra.mxu0 %v5240_v27 }
0x124a   : > { %4653 = vmatprep.subr.mxu0 %v4973_v39 }
0x12fb   : > { %v2325_v8 = vpop.f32.mrf.mxu1  ;;  %v2478_v9 = vpop.f32.mrf.mxu0 }
0x12fc   : > { %v2326_v10 = vadd.f32 %v2325_v8, %v5724_v7 }
0x12fd   : > { %v4586_v35 = vpop.f32.mrf.mxu1  ;;  %v4606_v37 = vpop.f32.mrf.mxu0 }
0x12fe   : > { %4857 = vtanh.f32 %v2326_v10 }
0x130b   : > { %v4858_v38 = vpop.eup %4857 }
0x130c   : > { %4596 = vmatmul.mubr.msk.f32.vlgmr.msra.gmra.mxu1 %vm426_vm7, %v4858_v38 }
0x130d   : > { %4608 = vmatpush3.msk.msra.mxu1 %vm345_vm4, %v5235_v26  ;;  %4613 = vmatprep.mubr.msk.f32.mxu1 %vm4974_vm5, %v4973_v39 }
0x130e   : > { %4609 = vmatprep.subr.mxu1 %v4973_v39 }
0x130f   : > { %4610 = vmatpush3.msra.mxu1 %v5230_v25 }
0x1310   : > { %4611 = vmatprep.subr.mxu1 %v4973_v39 }
0x1311   : > { %4612 = vmatpush3.msra.mxu1 %v5225_v24 }
0x1312   : > { %4633 = vmatprep.subr.mxu1 %v4973_v39 }
0x13cc   : > { %v2399_v40 = vpop.f32.mrf.mxu1 }
0x13cd   : > { %v2400_v42 = vadd.f32 %v5200_v19, %v2399_v40 }
0x13ce   : > { %v4597_v43 = vpop.f32.mrf.mxu1 }
0x13cf   : > { %v2404_v45 = vmin.f32 %v2400_v42, 20.0  ;;  %vm2403_vm15 = vcmp.gt.f32.partialorder %v2400_v42, 20.0 }
0x13d1   : > { %v2405_v41 = vmul.f32 1.442695, %v2404_v45 }
0x13d3   : > { %4859 = vpow2.f32 %v2405_v41 }
0x13e0   : > { %v4860_v44 = vpop.eup %4859 }
0x13e1   : > { %v2407_v46 = vadd.f32 1.0, %v4860_v44 }
0x13e3   : > { %4861 = vlog2.f32 %v2407_v46 }
0x13f0   : > { %v4862_v47 = vpop.eup %4861 }
0x13f1   : > { %v2409_v48 = vmul.f32 0.6931472, %v4862_v47 }
0x13f3   : > { %v2410_v49 = vsel %vm2403_vm15, %v2400_v42, %v2409_v48 }
0x13f4   : > { %v2411_v50 = vmul.f32 %v5205_v20, %v2410_v49  ;;  %v3007_v49 = vadd.f32 %v5796_v59, %v5432_v34 }
0x13f6   : > { %4614 = vmatmul.mubr.msk.f32.vlgmr.msra.gmra.mxu1 %vm341_vm6, %v2411_v50 }
0x13f7   : > { %4634 = vmatpush3.msk.msra.mxu1 %vm345_vm4, %v5169_v13  ;;  %4639 = vmatprep.mubr.msk.f32.mxu1 %vm4974_vm5, %v4973_v39 }
0x13f8   : > { %4635 = vmatprep.subr.mxu1 %v4973_v39 }
0x13f9   : > { %4636 = vmatpush3.msra.mxu1 %v5164_v12 }
0x13fa   : > { %4637 = vmatprep.subr.mxu1 %v4973_v39 }
0x13fb   : > { %4638 = vmatpush3.msra.mxu1 %v5159_v11 }
0x13fc   : > { %4642 = vmatprep.subr.mxu1 %v4973_v39 }
0x14b6   : > { %v2551_v51 = vpop.f32.mrf.mxu1 }
0x14b7   : > { %v2555_v52 = vmul.f32 %v2551_v51, %v2478_v9 }
0x14b8   : > { %v4615_v53 = vpop.f32.mrf.mxu1 }
0x14b9   : > { %4631 = vmatmul.mubr.msk.f32.vlgmr.msra.gmra.mxu0 %vm665_vm10, %v2555_v52 }
0x14ba   : > { %4654 = vmatpush3.msk.msra.mxu0 %vm345_vm4, %v5220_v23  ;;  %4659 = vmatprep.mubr.msk.f32.mxu0 %vm4974_vm5, %v4973_v39 }
0x14bb   : > { %4655 = vmatprep.subr.mxu0 %v4973_v39 }
0x14bc   : > { %4656 = vmatpush3.msra.mxu0 %v5215_v22 }
0x14bd   : > { %4657 = vmatprep.subr.mxu0 %v4973_v39 }
0x14be   : > { %4658 = vmatpush3.msra.mxu0 %v5210_v21 }
0x14bf   : > { %4671 = vmatprep.subr.mxu0 %v4973_v39 }
0x1579   : > { %v2625_v54 = vpop.f32.mrf.mxu0 }
0x157a   : > { %v2626_v55 = vadd.f32 %v2625_v54, %v2411_v50 }
0x157b   : > { %v4632_v56 = vpop.f32.mrf.mxu0 }
0x157c   : > { %v2629_v57 = vmul.f32 %v2626_v55, %v5391_v4 }
0x157e   : > { %v5761_v58 = vadd.f32 %v2629_v57, %v5689_v6 }
0x1580   : > { %4640 = vmatmul.mubr.msk.f32.vlgmr.msra.gmra.mxu1 %vm341_vm6, %v5761_v58  ;;  %4660 = vmatmul.mubr.msk.f32.vlgmr.msra.gmra.mxu0 %vm341_vm6, %v5761_v58 }
0x1581   : > { %4643 = vmatpush3.msra.mxu1 %v5195_v18  ;;  %4650 = vmatprep.mubr.msk.f32.mxu1 %vm4974_vm5, %v4973_v39 }
0x1582   : > { %4644 = vmatprep.subr.mxu1 %v4973_v39  ;;  %4672 = vmatpush3.msk.msra.mxu0 %vm669_vm8, %v5270_v33 }
0x1583   : > { %4645 = vmatpush3.msra.mxu1 %v5190_v17  ;;  %4673 = vmatprep.subr.mxu0 %v4973_v39 }
0x1584   : > { %4646 = vmatprep.subr.mxu1 %v4973_v39  ;;  %4674 = vmatpush3.msra.mxu0 %v5265_v32 }
0x1585   : > { %4647 = vmatpush3.msra.mxu1 %v5185_v16  ;;  %4675 = vmatprep.subr.mxu0 %v4973_v39 }
0x1586   : > { %4648 = vmatprep.subr.mxu1 %v4973_v39  ;;  %4676 = vmatpush3.msra.mxu0 %v5260_v31 }
0x1587   : > { %4649 = vmatpush3.msra.mxu1 %v5180_v15  ;;  %4677 = vmatprep.subr.mxu0 %v4973_v39 }
0x1588   : > { %4662 = vmatprep.subr.mxu1 %v4973_v39  ;;  %4678 = vmatpush3.msra.mxu0 %v5255_v30 }
0x1589   : > { %4679 = vmatprep.subr.mxu0 %v4973_v39  ;;  %4685 = vmatprep.mubr.msk.f32.mxu0 %vm4974_vm5, %v4973_v39 }
0x158a   : > { %4680 = vmatpush3.msra.mxu0 %v5250_v29 }
0x158b   : > { %4681 = vmatprep.subr.mxu0 %v4973_v39 }
0x158c   : > { %4682 = vmatpush3.msra.mxu0 %v5245_v28 }
0x158d   : > { %4683 = vmatprep.subr.mxu0 %v4973_v39 }
0x158e   : > { %4684 = vmatpush3.msra.mxu0 %v5240_v27 }
0x158f   : > { %4708 = vmatprep.subr.mxu0 %v4973_v39 }
0x1640   : > { %v2701_v60 = vpop.f32.mrf.mxu1  ;;  %v2854_v61 = vpop.f32.mrf.mxu0 }
0x1641   : > { %v2702_v62 = vadd.f32 %v2701_v60, %v5796_v59 }
0x1642   : > { %v4641_v63 = vpop.f32.mrf.mxu1  ;;  %v4661_v0 = vpop.f32.mrf.mxu0 }
0x1643   : > { %4863 = vtanh.f32 %v2702_v62 }
0x1650   : > { %v4864_v1 = vpop.eup %4863 }
0x1651   : > { %4651 = vmatmul.mubr.msk.f32.vlgmr.msra.gmra.mxu1 %vm426_vm7, %v4864_v1 }
0x1652   : > { %4663 = vmatpush3.msk.msra.mxu1 %vm345_vm4, %v5235_v26  ;;  %4668 = vmatprep.mubr.msk.f32.mxu1 %vm4974_vm5, %v4973_v39 }
0x1653   : > { %4664 = vmatprep.subr.mxu1 %v4973_v39 }
0x1654   : > { %4665 = vmatpush3.msra.mxu1 %v5230_v25 }
0x1655   : > { %4666 = vmatprep.subr.mxu1 %v4973_v39 }
0x1656   : > { %4667 = vmatpush3.msra.mxu1 %v5225_v24 }
0x1657   : > { %4688 = vmatprep.subr.mxu1 %v4973_v39 }
0x1711   : > { %v2775_v3 = vpop.f32.mrf.mxu1 }
0x1712   : > { %v2776_v5 = vadd.f32 %v5200_v19, %v2775_v3 }
0x1713   : > { %v4652_v6 = vpop.f32.mrf.mxu1 }
0x1714   : > { %v2780_v7 = vmin.f32 %v2776_v5, 20.0  ;;  %vm2779_vm0 = vcmp.gt.f32.partialorder %v2776_v5, 20.0 }
0x1716   : > { %v2781_v8 = vmul.f32 1.442695, %v2780_v7 }
0x1718   : > { %4865 = vpow2.f32 %v2781_v8 }
0x1725   : > { %v4866_v9 = vpop.eup %4865 }
0x1726   : > { %v2783_v10 = vadd.f32 1.0, %v4866_v9 }
0x1728   : > { %4867 = vlog2.f32 %v2783_v10 }
0x1735   : > { %v4868_v35 = vpop.eup %4867 }
0x1736   : > { %v2785_v37 = vmul.f32 0.6931472, %v4868_v35 }
0x1738   : > { %v2786_v38 = vsel %vm2779_vm0, %v2776_v5, %v2785_v37 }
0x1739   : > { %v2787_v40 = vmul.f32 %v5205_v20, %v2786_v38 }
0x173b   : > { %4669 = vmatmul.mubr.msk.f32.vlgmr.msra.gmra.mxu1 %vm341_vm6, %v2787_v40 }
0x173c   : > { %4689 = vmatpush3.msk.msra.mxu1 %vm345_vm4, %v5169_v13  ;;  %4694 = vmatprep.mubr.msk.f32.mxu1 %vm4974_vm5, %v4973_v39 }
0x173d   : > { %4690 = vmatprep.subr.mxu1 %v4973_v39 }
0x173e   : > { %4691 = vmatpush3.msra.mxu1 %v5164_v12 }
0x173f   : > { %4692 = vmatprep.subr.mxu1 %v4973_v39 }
0x1740   : > { %4693 = vmatpush3.msra.mxu1 %v5159_v11 }
0x1741   : > { %4697 = vmatprep.subr.mxu1 %v4973_v39 }
0x17fb   : > { %v2927_v42 = vpop.f32.mrf.mxu1 }
0x17fc   : > { %v2931_v43 = vmul.f32 %v2927_v42, %v2854_v61 }
0x17fd   : > { %v4670_v45 = vpop.f32.mrf.mxu1 }
0x17fe   : > { %4686 = vmatmul.mubr.msk.f32.vlgmr.msra.gmra.mxu0 %vm665_vm10, %v2931_v43 }
0x17ff   : > { %4709 = vmatpush3.msk.msra.mxu0 %vm345_vm4, %v5220_v23  ;;  %4714 = vmatprep.mubr.msk.f32.mxu0 %vm4974_vm5, %v4973_v39 }
0x1800   : > { %4710 = vmatprep.subr.mxu0 %v4973_v39 }
0x1801   : > { %4711 = vmatpush3.msra.mxu0 %v5215_v22 }
0x1802   : > { %4712 = vmatprep.subr.mxu0 %v4973_v39 }
0x1803   : > { %4713 = vmatpush3.msra.mxu0 %v5210_v21 }
0x1804   : > { %4726 = vmatprep.subr.mxu0 %v4973_v39 }
0x18be   : > { %v3001_v41 = vpop.f32.mrf.mxu0 }
0x18bf   : > { %v3002_v44 = vadd.f32 %v3001_v41, %v2787_v40 }
0x18c0   : > { %v4687_v46 = vpop.f32.mrf.mxu0 }
0x18c1   : > { %v3005_v47 = vmul.f32 %v3002_v44, %v5391_v4 }
0x18c3   : > { %v5833_v48 = vadd.f32 %v3005_v47, %v5761_v58 }
0x18c5   : > { %4695 = vmatmul.mubr.msk.f32.vlgmr.msra.gmra.mxu1 %vm341_vm6, %v5833_v48  ;;  %4715 = vmatmul.mubr.msk.f32.vlgmr.msra.gmra.mxu0 %vm341_vm6, %v5833_v48 }
0x18c6   : > { %4698 = vmatpush3.msra.mxu1 %v5195_v18  ;;  %4705 = vmatprep.mubr.msk.f32.mxu1 %vm4974_vm5, %v4973_v39 }
0x18c7   : > { %4699 = vmatprep.subr.mxu1 %v4973_v39  ;;  %4727 = vmatpush3.msk.msra.mxu0 %vm669_vm8, %v5270_v33 }
0x18c8   : > { %4700 = vmatpush3.msra.mxu1 %v5190_v17  ;;  %4728 = vmatprep.subr.mxu0 %v4973_v39 }
0x18c9   : > { %4701 = vmatprep.subr.mxu1 %v4973_v39  ;;  %4729 = vmatpush3.msra.mxu0 %v5265_v32 }
0x18ca   : > { %4702 = vmatpush3.msra.mxu1 %v5185_v16  ;;  %4730 = vmatprep.subr.mxu0 %v4973_v39 }
0x18cb   : > { %4703 = vmatprep.subr.mxu1 %v4973_v39  ;;  %4731 = vmatpush3.msra.mxu0 %v5260_v31 }
0x18cc   : > { %4704 = vmatpush3.msra.mxu1 %v5180_v15  ;;  %4732 = vmatprep.subr.mxu0 %v4973_v39 }
0x18cd   : > { %4717 = vmatprep.subr.mxu1 %v4973_v39  ;;  %4733 = vmatpush3.msra.mxu0 %v5255_v30 }
0x18ce   : > { %4734 = vmatprep.subr.mxu0 %v4973_v39  ;;  %4740 = vmatprep.mubr.msk.f32.mxu0 %vm4974_vm5, %v4973_v39 }
0x18cf   : > { %4735 = vmatpush3.msra.mxu0 %v5250_v29 }
0x18d0   : > { %4736 = vmatprep.subr.mxu0 %v4973_v39 }
0x18d1   : > { %4737 = vmatpush3.msra.mxu0 %v5245_v28 }
0x18d2   : > { %4738 = vmatprep.subr.mxu0 %v4973_v39 }
0x18d3   : > { %4739 = vmatpush3.msra.mxu0 %v5240_v27 }
0x1985   : > { %v3077_v50 = vpop.f32.mrf.mxu1  ;;  %v3230_v51 = vpop.f32.mrf.mxu0 }
0x1986   : > { %v3078_v52 = vadd.f32 %v3077_v50, %v3007_v49 }
0x1987   : > { %v4696_v53 = vpop.f32.mrf.mxu1  ;;  %v4716_v54 = vpop.f32.mrf.mxu0 }
0x1988   : > { %4869 = vtanh.f32 %v3078_v52 }
0x1995   : > { %v4870_v55 = vpop.eup %4869 }
0x1996   : > { %4706 = vmatmul.mubr.msk.f32.vlgmr.msra.gmra.mxu1 %vm426_vm7, %v4870_v55 }
0x1997   : > { %4718 = vmatpush3.msk.msra.mxu1 %vm345_vm4, %v5235_v26  ;;  %4723 = vmatprep.mubr.msk.f32.mxu1 %vm4974_vm5, %v4973_v39 }
0x1998   : > { %4719 = vmatprep.subr.mxu1 %v4973_v39 }
0x1999   : > { %4720 = vmatpush3.msra.mxu1 %v5230_v25 }
0x199a   : > { %4721 = vmatprep.subr.mxu1 %v4973_v39 }
0x199b   : > { %4722 = vmatpush3.msra.mxu1 %v5225_v24 }
0x1a56   : > { %v3151_v34 = vpop.f32.mrf.mxu1 }
0x1a57   : > { %v3152_v56 = vadd.f32 %v5200_v19, %v3151_v34 }
0x1a58   : > { %v4707_v57 = vpop.f32.mrf.mxu1 }
0x1a59   : > { %v3156_v58 = vmin.f32 %v3152_v56, 20.0  ;;  %vm3155_vm2 = vcmp.gt.f32.partialorder %v3152_v56, 20.0 }
0x1a5b   : > { %v3157_v59 = vmul.f32 1.442695, %v3156_v58 }
0x1a5d   : > { %4871 = vpow2.f32 %v3157_v59 }
0x1a6a   : > { %v4872_v60 = vpop.eup %4871 }
0x1a6b   : > { %v3159_v61 = vadd.f32 1.0, %v4872_v60 }
0x1a6d   : > { %4873 = vlog2.f32 %v3159_v61 }
0x1a7a   : > { %v4874_v62 = vpop.eup %4873 }
0x1a7b   : > { %v3161_v63 = vmul.f32 0.6931472, %v4874_v62 }
0x1a7d   : > { %v3162_v0 = vsel %vm3155_vm2, %v3152_v56, %v3161_v63 }
0x1a7e   : > { %v3163_v1 = vmul.f32 %v5205_v20, %v3162_v0 }
0x1a80   : > { %4724 = vmatmul.mubr.msk.f32.vlgmr.msra.gmra.mxu1 %vm341_vm6, %v3163_v1 }
0x1b40   : > { %v3303_v39 = vpop.f32.mrf.mxu1 }
0x1b41   : > { %v3307_v3 = vmul.f32 %v3303_v39, %v3230_v51 }
0x1b42   : > { %v4725_v5 = vpop.f32.mrf.mxu1 }
0x1b43   : > { %4741 = vmatmul.mubr.msk.f32.vlgmr.msra.gmra.mxu0 %vm665_vm10, %v3307_v3 }
0x1c03   : > { %v3377_v6 = vpop.f32.mrf.mxu0 }
0x1c04   : > { %v3378_v7 = vadd.f32 %v3377_v6, %v3163_v1 }
0x1c05   : > { %v4742_v8 = vpop.f32.mrf.mxu0 }
0x1c06   : > { %v3381_v9 = vmul.f32 %v3378_v7, %v5391_v4  ;;  %323 = sbr.rel (!%p320_p2) target bundleno = 475 (0x1db), region = 168 }
0x1c08   : > { %v3382_v35 = vadd.f32 %v3381_v9, %v5833_v48  }
0x1c0a   : > { %3385 = vst.msk [vmem:[%s3384_s0] sm:$0xf] %vm315_vm3, %v3382_v35  ;;  %v6094_v10 = vmov %v3382_v35  ;;  %v6095_v38 = vmov (%p320_p2), %v3382_v35 }
0x1c0b PF:  { %4752 = vmatprep.subr.mxu1 %v4971_v2  ;;  %4743 = vmatprep.subr.mxu0 %v4971_v2  ;;  %vm3455_vm4 = vcmask 1044480   ;;  %v3531_v4 = vld [vmem:[%s6056_s20 + $0x10] sm:$0x1f]  ;;  %v3530_v15 = vld [vmem:[%s6056_s20 + $0x8] sm:$0xff]  ;;  %v3386_v16 = vlaneseq  ;;  %s5913_s15 = sld [smem:[#allocation7]]  ;;  %v3529_v18 = vld [vmem:[%s6056_s20] sm:$0xff]  ;;  %v4966_v38 = vphi %v6092_v38, %v6095_v38  }
0x1c0c   :  { %v3450_v10 = vld [vmem:[%s6055_s19 + $0x10] sm:$0x1f]  ;;  %4753 = vmatpush3.msk.msra.mxu1 %vm3455_vm4, %v3531_v4  ;;  %v3449_v17 = vld [vmem:[%s6055_s19 + $0x8] sm:$0xff]  ;;  %v3448_v19 = vld [vmem:[%s6055_s19] sm:$0xff]  ;;  %s5926_s30 = sld [smem:[#allocation7 + $0x1]]  ;;  %4749 = vmatprep.mubr.msk.f32.mxu0 %vm4972_vm1, %v4971_v2  ;;  %v4975_v23 = vmov 0  }
0x1c0d   :  { %4744 = vmatpush3.msk.msra.mxu0 %vm3455_vm4, %v3450_v10  ;;  %4754 = vmatprep.subr.mxu1 %v4971_v2  ;;  %v5924_v20 = vshrl.u32 %v3386_v16, 7  ;;  %s5928_s3 = sld [smem:[#allocation7 + $0x2]]  ;;  %v3784_v21 = vld [vmem:[%s6060_s24] sm:$0xff]  ;;  %vm3451_vm8 = vcmask 171008   ;;  %v3612_v50 = vld [vmem:[%s6057_s21 + $0x18] sm:$0x7] }
0x1c0e   :  { %4745 = vmatprep.subr.mxu0 %v4971_v2  ;;  %4755 = vmatpush3.msra.mxu1 %v3530_v15  ;;  %s5933_s20 = sld [smem:[#allocation7 + $0x3]]  ;;  %vm3617_vm9 = vcmask 1042432   ;;  %v3611_v51 = vld [vmem:[%s6057_s21 + $0x10] sm:$0xff]  ;;  %v3700_v34 = vrot.slane %v4966_v38, 4  ;;  %vm3702_vm10 = vcmask 1043456   ;;  %v3705_v63 = vrot.slane %v5275_v36, 4 }
0x1c0f   :  { %4746 = vmatpush3.msra.mxu0 %v3449_v17  ;;  %4756 = vmatprep.subr.mxu1 %v4971_v2  ;;  %vm3388_vm3 = vcmp.eq.s32.totalorder %v5924_v20, 0  ;;  %vm3403_vm5 = vcmp.eq.s32.totalorder %v5924_v20, 1  ;;  %s5936_s19 = sld [smem:[#allocation9]]  ;;  %vm3418_vm6 = vcmp.eq.s32.totalorder %v5924_v20, 2  ;;  %vm3433_vm7 = vcmp.eq.s32.totalorder %v5924_v20, 3 }
0x1c10   :  { %4747 = vmatprep.subr.mxu0 %v4971_v2  ;;  %4757 = vmatpush3.msra.mxu1 %v3529_v18  ;;  %s5946_s10 = sld [smem:[#allocation9 + $0x1]]  ;;  %v4036_v22 = vsel %vm3388_vm3, 1.0, %v4971_v2  ;;  %v4039_v24 = vsel %vm3403_vm5, 1.0, %v4971_v2  ;;  %v4044_v26 = vsel %vm3418_vm6, 1.0, %v4971_v2  ;;  %v4049_v29 = vsel %vm3433_vm7, 1.0, %v4971_v2 }
0x1c11   :  { %4748 = vmatpush3.msra.mxu0 %v3448_v19  ;;  %4758 = vmatprep.mubr.msk.f32.mxu1 %vm4972_vm1, %v4971_v2  ;;  %s4037_s0 = sshll.u32 %s5913_s15, 2  ;;  %s5952_s24 = sld [smem:[#allocation9 + $0x2]]  ;;  %v3793_v61 = vsub.s32 0, %v5924_v20  ;;  %v3707_v5 = vsel %vm3702_vm10, %v5275_v36, %v3705_v63  ;;  %vm3810_vm11 = vcmask 261120   ;;  %v3691_v4 = vld [vmem:[%s6058_s22] sm:$0xf] }
0x1c12   :  { %4772 = vmatprep.subr.mxu1 %v4971_v2  ;;  %4875 = vset.pattern.permute.xlu0 %v4975_v23  ;;  %s4041_s11 = sshll.u32 %s5926_s30, 2  ;;  %s3393_s29 = scalar_lea.vmem [#allocation2], %s4037_s0  ;;  %vm3693_vm12 = vcmask 68608   ;;  %vm3903_vm15 = vcmask 48132   ;;  %vm3894_vm0 = vcmask 44032  }
0x1c13   :  { %3787 = vperm.xlu0 %4875, %v3784_v21   ;;  %4761 = vmatprep.subr.mxu0 %v4971_v2  ;;  %v3394_v25 = vld [vmem:[%s3393_s29] sm:$0xf]  ;;  %s4046_s17 = sshll.u32 %s5928_s3, 2  ;;  %s3408_s2 = scalar_lea.vmem [#allocation2], %s4041_s11  ;;  %v3794_v1 = vrot.slane %v5175_v14, %v3793_v61 }
0x1c14   :  { %v3395_v27 = vmul.f32 %v4036_v22, %v3394_v25  ;;  %v3409_v28 = vld [vmem:[%s3408_s2] sm:$0xf]  ;;  %s4051_s7 = sshll.u32 %s5933_s20, 2  ;;  %s3423_s25 = scalar_lea.vmem [#allocation2], %s4046_s17  ;;  %v3900_v25 = vand.u32 127, %v3386_v16 }
0x1c15   :  { %v3410_v30 = vmul.f32 %v4039_v24, %v3409_v28  ;;  %v3424_v31 = vld [vmem:[%s3423_s25] sm:$0xf]  ;;  %s4038_s12 = sshll.u32 %s5936_s19, 2  ;;  %s3438_s13 = scalar_lea.vmem [#allocation2], %s4051_s7 }
0x1c16   :  { %v3425_v32 = vmul.f32 %v4044_v26, %v3424_v31  ;;  %v3439_v33 = vld [vmem:[%s3438_s13] sm:$0xf]  ;;  %s4043_s1 = sshll.u32 %s5946_s10, 2  ;;  %s3399_s14 = scalar_lea.vmem [#allocation2], %s4038_s12  ;;  %vm3901_vm13 = vcmp.lt.s32.totalorder %v3900_v25, 3 }
0x1c17   :  { %v3411_v37 = vadd.f32 %v3410_v30, %v3395_v27  ;;  %v3440_v40 = vmul.f32 %v4049_v29, %v3439_v33  ;;  %v3400_v42 = vld [vmem:[%s3399_s14] sm:$0xf]  ;;  %s4048_s4 = sshll.u32 %s5952_s24, 2  ;;  %s3414_s15 = scalar_lea.vmem [#allocation2], %s4043_s1 }
0x1c18   :  { %v3401_v43 = vmul.f32 %v4036_v22, %v3400_v42  ;;  %v3415_v45 = vld [vmem:[%s3414_s15] sm:$0xf]  ;;  %s4052_s8 = sld [smem:[#allocation9 + $0x3]]  ;;  %s3429_s5 = scalar_lea.vmem [#allocation2], %s4048_s4 }
0x1c19   :  { %v3426_v41 = vadd.f32 %v3425_v32, %v3411_v37  ;;  %v3416_v44 = vmul.f32 %v4039_v24, %v3415_v45  ;;  %v3430_v46 = vld [vmem:[%s3429_s5] sm:$0xf]  ;;  %s6096_s29 = sld [smem:[#allocation25_spill]]  ;;  %s4976_s5 = smov [#allocation10]  }
0x1c1a   :  { %v3431_v49 = vmul.f32 %v4044_v26, %v3430_v46  ;;  %s6097_s15 = sld [smem:[#allocation26_spill]]  ;;  %v3892_v28 = vld [vmem:[%s6059_s23] sm:$0xf]  ;;  %s3915_s9 = sshll.u32 %s4976_s5, 4  ;;  %s3916_s9 = int_to_ptr.vmem [resolvable:$true] %s3915_s9 }
0x1c1b   :  { %v3441_v47 = vadd.f32 %v3440_v40, %v3426_v41  ;;  %v3417_v48 = vadd.f32 %v3416_v44, %v3401_v43  ;;  %s4918_s18 = scalar_lea.vmem %s3916_s9, 64  ;;  %p4923_p4 = scmp.lt.s32.totalorder %s3916_s9, %s3916_s9 }
0x1c1c   :  { %p4919_p3 = scmp.ne.s32.totalorder %s3916_s9, %s4918_s18  ;;  %p4924_p5 = scmp.lt.s32.totalorder %s4918_s18, %s4918_s18 }
0x1c1d   :  { %4750 = vmatmul.mubr.msk.f32.vlgmr.msra.gmra.mxu0 %vm3451_vm8, %v3441_v47  ;;  %v3432_v52 = vadd.f32 %v3431_v49, %v3417_v48 }
0x1c1e   :  { %s4053_s20 = sshll.u32 %s4052_s8, 2  ;;  %4762 = vmatpush3.msk.msra.mxu0 %vm3617_vm9, %v3612_v50  ;;  %4769 = vmatprep.mubr.msk.f32.mxu0 %vm4972_vm1, %v4971_v2  ;;  %p4925_p6 = por %p4924_p5, %p4923_p4 }
0x1c1f   :  { %4763 = vmatprep.subr.mxu0 %v4971_v2  ;;  %s3444_s19 = scalar_lea.vmem [#allocation2], %s4053_s20  ;;  %v3801_v38 = vld [vmem:[%s6096_s29 + $0x10] sm:$0xff]  ;;  %v3800_v57 = vld [vmem:[%s6096_s29 + $0x8] sm:$0xff]  ;;  %v3799_v58 = vld [vmem:[%s6096_s29] sm:$0xff] }
0x1c20   :  { %v3445_v53 = vld [vmem:[%s3444_s19] sm:$0xf]  ;;  %4764 = vmatpush3.msra.mxu0 %v3611_v51  ;;  %p4926_p7 = pnand %p4925_p6, %p4919_p3 }
0x1c21   :  { %v3446_v54 = vmul.f32 %v4049_v29, %v3445_v53  ;;  %4765 = vmatprep.subr.mxu0 %v4971_v2  ;;  %v4062_v36 = vld [vmem:[%s6097_s15] ss:$0 sm:$0xff] }
0x1c23   :  { %v3447_v55 = vadd.f32 %v3446_v54, %v3432_v52 }
0x1c25   :  { %4759 = vmatmul.mubr.msk.f32.vlgmr.msra.gmra.mxu1 %vm3451_vm8, %v3447_v55  ;;  %v3703_v56 = vsel %vm3702_vm10, %v3447_v55, %v3700_v34 }
0x1c26   :  { %4773 = vmatpush3.msk.msra.mxu1 %vm3455_vm4, %v5169_v13  ;;  %4778 = vmatprep.mubr.msk.f32.mxu1 %vm4972_vm1, %v4971_v2  ;;  %v3610_v13 = vld [vmem:[%s6057_s21 + $0x8] sm:$0xff] }
0x1c27   :  { %4774 = vmatprep.subr.mxu1 %v4971_v2  ;;  %4766 = vmatpush3.msra.mxu0 %v3610_v13 }
0x1c28   :  { %4775 = vmatpush3.msra.mxu1 %v5164_v12  ;;  %4767 = vmatprep.subr.mxu0 %v4971_v2  ;;  %v3609_v12 = vld [vmem:[%s6057_s21] sm:$0xff] }
0x1c29   :  { %4776 = vmatprep.subr.mxu1 %v4971_v2  ;;  %4768 = vmatpush3.msra.mxu0 %v3609_v12 }
0x1c2a   :  { %4777 = vmatpush3.msra.mxu1 %v5159_v11  ;;  %v3802_v11 = vld [vmem:[%s6096_s29 + $0x18] sm:$0xff] }
0x1c2b   :  { %4779 = vmatmul.mubr.msk.f32.vlgmr.msra.gmra.mxu1 %vm3451_vm8, %v3703_v56  ;;  %4781 = vmatprep.subr.mxu1 %v4971_v2 }
0x1c2c   :  { %4789 = vmatprep.mubr.msk.f32.mxu1 %vm4972_vm1, %v4971_v2  ;;  %4782 = vmatpush3.msra.mxu1 %v3802_v11  ;;  %vm3613_vm1 = vcmask 220160  }
0x1c2d   :  { %4783 = vmatprep.subr.mxu1 %v4971_v2 }
0x1c2e   :  { %4784 = vmatpush3.msra.mxu1 %v3801_v38 }
0x1c2f   :  { %4785 = vmatprep.subr.mxu1 %v4971_v2 }
0x1c30   :  { %4786 = vmatpush3.msra.mxu1 %v3800_v57 }
0x1c31   :  { %4787 = vmatprep.subr.mxu1 %v4971_v2 }
0x1c32   :  { %4788 = vmatpush3.msra.mxu1 %v3799_v58 }
0x1c8e   :  { %v3788_v3 = vpop.permute.xlu0 %3787 }
0x1c8f   :  { %v3796_v6 = vmul.f32 %v3794_v1, %v3788_v3 }
0x1cdd   :  { %v3525_v59 = vpop.f32.mrf.mxu0 }
0x1cdf   :  { %v4751_v60 = vpop.f32.mrf.mxu0 }
0x1ce5   :  { %v3604_v62 = vpop.f32.mrf.mxu1 }
0x1ce6   :  { %v3608_v0 = vmul.f32 %v3604_v62, %v3525_v59 }
0x1ce7   :  { %v4760_v39 = vpop.f32.mrf.mxu1 }
0x1ce8   :  { %4770 = vmatmul.mubr.msk.f32.vlgmr.msra.gmra.mxu0 %vm3613_vm1, %v3608_v0 }
0x1ceb   :  { %v3780_v2 = vpop.f32.mrf.mxu1 }
0x1cec   :  { %v3781_v7 = vadd.f32 %v3780_v2, %v3707_v5 }
0x1ced   :  { %v4780_v8 = vpop.f32.mrf.mxu1 }
0x1cee   :  { %v3797_v9 = vadd.f32 %v3796_v6, %v3781_v7 }
0x1cf0   :  { %4876 = vtanh.f32 %v3797_v9 }
0x1cfd   :  { %v4877_v35 = vpop.eup %4876 }
0x1cfe   :  { %4790 = vmatmul.mubr.msk.f32.vlgmr.msra.gmra.mxu1 %vm3810_vm11, %v4877_v35 }
0x1da8   :  { %v3687_v14 = vpop.f32.mrf.mxu0 }
0x1da9   :  { %v3692_v10 = vmul.f32 %v3691_v4, %v3687_v14 }
0x1daa   :  { %v4771_v15 = vpop.f32.mrf.mxu0 }
0x1dab   :  { %v3694_v17 = vsel %vm3693_vm12, %v3692_v10, 0.0 }
0x1dac   :  { %3695 = vadd.xlane.f32.xlu0 %v3694_v17 }
0x1dbe   :  { %v3880_v18 = vpop.f32.mrf.mxu1 }
0x1dbf   :  { %v3881_v19 = vadd.f32 %v4062_v36, %v3880_v18 }
0x1dc0   :  { %v4791_v20 = vpop.f32.mrf.mxu1 }
0x1dc1   :  { %v3885_v21 = vmin.f32 %v3881_v19, 20.0  ;;  %vm3884_vm14 = vcmp.gt.f32.partialorder %v3881_v19, 20.0 }
0x1dc3   :  { %v3886_v22 = vmul.f32 1.442695, %v3885_v21 }
0x1dc5   :  { %4878 = vpow2.f32 %v3886_v22 }
0x1dd2   :  { %v4879_v23 = vpop.eup %4878 }
0x1dd3   :  { %v3888_v24 = vadd.f32 1.0, %v4879_v23 }
0x1dd5   :  { %4880 = vlog2.f32 %v3888_v24 }
0x1de2   :  { %v4881_v26 = vpop.eup %4880 }
0x1de3   :  { %v3890_v27 = vmul.f32 0.6931472, %v4881_v26 }
0x1de5   :  { %v3891_v29 = vsel %vm3884_vm14, %v3881_v19, %v3890_v27 }
0x1de6   :  { %v3893_v30 = vmul.f32 %v3892_v28, %v3891_v29  ;;  %v3902_v31 = vsel %vm3901_vm13, %v3891_v29, %v3881_v19 }
0x1de7   :  { %3904 = vst.msk [vmem:[#allocation10 - $0x4] sm:$0xf0] %vm3903_vm15, %v3902_v31 }
0x1de8   :  { %v3895_v32 = vsel %vm3894_vm0, %v3893_v30, 0.0 }
0x1de9   :  { %3896 = vadd.xlane.f32.xlu1 %v3895_v32 }
0x1dea   :  { %4929 = shalt.err (!%p4926_p7)
}
0x1deb   :  { %3918 = dma.vmem_to_hbm [thread:$0]  %s3916_s9, 64, %s6064_s28, [#allocation5]   ;;  %vm3697_vm2 = vcmask 3072  }
0x1e35   :  { %v3696_v16 = vpop.xlane.xlu0 %3695 }
0x1e36   :  { %3698 = vst.msk [vmem:[%s6062_s26] sm:$0xf] %vm3697_vm2, %v3696_v16 }
0x1e72   :  { %v3897_v33 = vpop.xlane.xlu1 %3896 }
0x1e73   :  { %3898 = vst.msk [vmem:[%s6063_s27] sm:$0xf] %vm3697_vm2, %v3897_v33 }
0x1e74   :  { %4954 = dma.done.wait [#allocation5], 64  }
0x1e75   :  { %4955 = vsyncadd [#allocation5], 4294967232 }
0x1e76   :  { %3926 = vsyncpa [#allocation5], 1 }
0x1e77   :  { %3927 = vsyncpa [#allocation6], 1 }
0x1e78   :  { %3928 = vsyncpa [#allocation8], 1 }

</bundles_post_ra>
